<compile_context>
chip_gen: v7x
topology: tpu7x:2x2x1
jax: 0.10.0
libtpu: 0.0.40
codegen_flags: <defaults>
</compile_context>

<pallas_src>
import functools
import numpy as np
import jax
import jax.numpy as jnp
from jax import lax
from jax.experimental import pallas as pl
from jax.experimental.pallas import tpu as pltpu


# ---------------------------------------------------------------------------
# small helpers
# ---------------------------------------------------------------------------

def _round_up(x, m):
    return ((x + m - 1) // m) * m


def _row_tiling(n, tm):
    """Effective row tile (multiple of 8) and padded row count."""
    tm_eff = _round_up(min(tm, _round_up(n, 8)), 8)
    n_pad = _round_up(n, tm_eff)
    return tm_eff, n_pad


def _pad_rows(x2, n_pad):
    n = x2.shape[0]
    if n_pad == n:
        return x2
    return jnp.pad(x2, ((0, n_pad - n), (0, 0)))


def _compiler_params():
    # 32 MiB scoped VMEM is safe on v5e/v6e/v7x and above the v5e default;
    # raise towards 64-96 MiB on v5e/v6e when sweeping tm up to 512-1024.
    return pltpu.CompilerParams(
        dimension_semantics=("parallel",),
        vmem_limit_bytes=32 * 1024 * 1024,
    )


# ---------------------------------------------------------------------------
# kernels
# ---------------------------------------------------------------------------

def linear_kernel(x_ref, w_ref, b_ref, o_ref):
    # x_ref: (tm, d_in) bf16, w_ref: (d_in, d_out) bf16, b_ref: (1, d_out) f32
    y = jnp.dot(x_ref[...], w_ref[...], preferred_element_type=jnp.float32)
    o_ref[...] = (y + b_ref[...]).astype(o_ref.dtype)


def ffn_kernel(x_ref, w1_ref, b1_ref, w2_ref, b2_ref, o_ref):
    # relu(x @ w1 + b1) @ w2 + b2  (PositionwiseFeedForward, eval-mode dropout)
    h = jnp.dot(x_ref[...], w1_ref[...], preferred_element_type=jnp.float32)
    h = jnp.maximum(h + b1_ref[...], 0.0)                      # bias+ReLU in f32
    y = jnp.dot(h.astype(jnp.bfloat16), w2_ref[...],
                preferred_element_type=jnp.float32)
    o_ref[...] = (y + b2_ref[...]).astype(o_ref.dtype)


def attention_kernel(q_ref, k_ref, v_ref, o_ref):
    # blocks: (1, S, d) bf16; q pre-scaled by 1/temperature in the wrapper
    s = jnp.einsum("bqd,bkd->bqk", q_ref[...], k_ref[...],
                   preferred_element_type=jnp.float32)          # (1, S, S)
    m = jnp.max(s, axis=-1, keepdims=True)
    p = jnp.exp(s - m)
    p = p / jnp.sum(p, axis=-1, keepdims=True)                  # softmax (f32)
    r = jnp.einsum("bqk,bkd->bqd", p.astype(jnp.bfloat16), v_ref[...],
                   preferred_element_type=jnp.float32)
    o_ref[...] = r.astype(o_ref.dtype)


def add_layernorm_kernel(x_ref, r_ref, g_ref, b_ref, o_ref, *, eps):
    # LayerNorm(x + r) with affine params (eps = 1e-6)
    y = x_ref[...] + r_ref[...]
    mean = jnp.mean(y, axis=-1, keepdims=True)
    yc = y - mean
    var = jnp.mean(yc * yc, axis=-1, keepdims=True)
    inv = lax.rsqrt(var + eps)
    o_ref[...] = (yc * inv * g_ref[...] + b_ref[...]).astype(o_ref.dtype)


# ---------------------------------------------------------------------------
# wrappers
# ---------------------------------------------------------------------------

def linear(x2, w, b, *, tm=256):
    n, d_in = x2.shape
    d_out = w.shape[1]
    tm_eff, n_pad = _row_tiling(n, tm)
    xp = _pad_rows(x2, n_pad).astype(jnp.bfloat16)
    out = pl.pallas_call(
        linear_kernel,
        out_shape=jax.ShapeDtypeStruct((n_pad, d_out), jnp.float32),
        grid_spec=pltpu.PrefetchScalarGridSpec(
            num_scalar_prefetch=0,
            grid=(n_pad // tm_eff,),
            in_specs=[
                pl.BlockSpec((tm_eff, d_in), lambda i: (i, 0)),
                pl.BlockSpec((d_in, d_out), lambda i: (0, 0)),
                pl.BlockSpec((1, d_out), lambda i: (0, 0)),
            ],
            out_specs=pl.BlockSpec((tm_eff, d_out), lambda i: (i, 0)),
        ),
        compiler_params=_compiler_params(),
        cost_estimate=pl.CostEstimate(
            flops=2 * n_pad * d_in * d_out,
            transcendentals=0,
            bytes_accessed=2 * n_pad * d_in + 2 * d_in * d_out + 4 * n_pad * d_out),
    )(xp, w.astype(jnp.bfloat16), b.reshape(1, d_out).astype(jnp.float32))
    return out[:n]


def positionwise_ffn(x2, w1, b1, w2, b2, *, tm=256):
    n, d_in = x2.shape
    d_hid = w1.shape[1]
    tm_eff, n_pad = _row_tiling(n, tm)
    xp = _pad_rows(x2, n_pad).astype(jnp.bfloat16)
    out = pl.pallas_call(
        ffn_kernel,
        out_shape=jax.ShapeDtypeStruct((n_pad, d_in), jnp.float32),
        grid_spec=pltpu.PrefetchScalarGridSpec(
            num_scalar_prefetch=0,
            grid=(n_pad // tm_eff,),
            in_specs=[
                pl.BlockSpec((tm_eff, d_in), lambda i: (i, 0)),
                pl.BlockSpec((d_in, d_hid), lambda i: (0, 0)),
                pl.BlockSpec((1, d_hid), lambda i: (0, 0)),
                pl.BlockSpec((d_hid, d_in), lambda i: (0, 0)),
                pl.BlockSpec((1, d_in), lambda i: (0, 0)),
            ],
            out_specs=pl.BlockSpec((tm_eff, d_in), lambda i: (i, 0)),
        ),
        compiler_params=_compiler_params(),
        cost_estimate=pl.CostEstimate(
            flops=4 * n_pad * d_in * d_hid,
            transcendentals=0,
            bytes_accessed=2 * n_pad * d_in + 4 * d_in * d_hid + 4 * n_pad * d_in),
    )(xp,
      w1.astype(jnp.bfloat16), b1.reshape(1, d_hid).astype(jnp.float32),
      w2.astype(jnp.bfloat16), b2.reshape(1, d_in).astype(jnp.float32))
    return out[:n]


def scaled_dot_product_attention(q, k, v):
    """q,k,v: (B*H, S, d) in bf16; q already divided by temperature."""
    bh, s_len, d_k = q.shape
    d_v = v.shape[-1]
    return pl.pallas_call(
        attention_kernel,
        out_shape=jax.ShapeDtypeStruct((bh, s_len, d_v), jnp.float32),
        grid_spec=pltpu.PrefetchScalarGridSpec(
            num_scalar_prefetch=0,
            grid=(bh,),
            in_specs=[
                pl.BlockSpec((1, s_len, d_k), lambda i: (i, 0, 0)),
                pl.BlockSpec((1, s_len, d_k), lambda i: (i, 0, 0)),
                pl.BlockSpec((1, s_len, d_v), lambda i: (i, 0, 0)),
            ],
            out_specs=pl.BlockSpec((1, s_len, d_v), lambda i: (i, 0, 0)),
        ),
        compiler_params=_compiler_params(),
        cost_estimate=pl.CostEstimate(
            flops=2 * bh * s_len * s_len * (d_k + d_v),
            transcendentals=bh * s_len * s_len,
            bytes_accessed=2 * bh * s_len * (2 * d_k + d_v) + 4 * bh * s_len * d_v),
    )(q, k, v)


def add_layernorm(x2, r2, gamma, beta, *, eps=1e-6, tm=256):
    n, d = x2.shape
    tm_eff, n_pad = _row_tiling(n, tm)
    xp = _pad_rows(x2, n_pad)
    rp = _pad_rows(r2, n_pad)
    out = pl.pallas_call(
        functools.partial(add_layernorm_kernel, eps=eps),
        out_shape=jax.ShapeDtypeStruct((n_pad, d), x2.dtype),
        grid_spec=pltpu.PrefetchScalarGridSpec(
            num_scalar_prefetch=0,
            grid=(n_pad // tm_eff,),
            in_specs=[
                pl.BlockSpec((tm_eff, d), lambda i: (i, 0)),
                pl.BlockSpec((tm_eff, d), lambda i: (i, 0)),
                pl.BlockSpec((1, d), lambda i: (0, 0)),
                pl.BlockSpec((1, d), lambda i: (0, 0)),
            ],
            out_specs=pl.BlockSpec((tm_eff, d), lambda i: (i, 0)),
        ),
        compiler_params=_compiler_params(),
    )(xp, rp, gamma.reshape(1, d).astype(jnp.float32),
      beta.reshape(1, d).astype(jnp.float32))
    return out[:n]


# ---------------------------------------------------------------------------
# Encoder forward (Pallas)
# ---------------------------------------------------------------------------

def encoder_layer_forward(p, x, *, n_head, d_k, d_v, tm=256):
    b, s_len, d_model = x.shape
    x2 = x.reshape(b * s_len, d_model)

    # --- Multi-head self-attention (fused QKV projection) ----------------
    qkv = linear(x2, p["w_qkv"], p["b_qkv"], tm=tm)          # (N, H*(2*dk+dv))
    hdk = n_head * d_k
    q, k, v = qkv[:, :hdk], qkv[:, hdk:2 * hdk], qkv[:, 2 * hdk:]

    def split_heads(t, d):
        return (t.reshape(b, s_len, n_head, d)
                 .transpose(0, 2, 1, 3)
                 .reshape(b * n_head, s_len, d))

    scale = 1.0 / float(np.sqrt(d_k))                        # temperature = sqrt(d_k)
    qh = (split_heads(q, d_k) * scale).astype(jnp.bfloat16)
    kh = split_heads(k, d_k).astype(jnp.bfloat16)
    vh = split_heads(v, d_v).astype(jnp.bfloat16)

    r = scaled_dot_product_attention(qh, kh, vh)             # (B*H, S, d_v) f32
    r = (r.reshape(b, n_head, s_len, d_v)
          .transpose(0, 2, 1, 3)
          .reshape(b * s_len, n_head * d_v))
    att = linear(r, p["w_fc"], p["b_fc"], tm=tm)             # (N, d_model)

    # drop1 -> identity (eval);  out_1 = LN1(x + att)
    out1 = add_layernorm(x2, att, p["ln1_g"], p["ln1_b"], eps=1e-6, tm=tm)

    # --- Position-wise FFN; drop2 -> identity (eval) ----------------------
    ffn = positionwise_ffn(out1, p["w1"], p["b1"], p["w2"], p["b2"], tm=tm)
    out = add_layernorm(out1, ffn, p["ln2_g"], p["ln2_b"], eps=1e-6, tm=tm)
    return out.reshape(b, s_len, d_model)


def encoder_forward(params, x, *, n_head, d_k, d_v, tm=256):
    h = x
    for p in params:
        h = encoder_layer_forward(p, h, n_head=n_head, d_k=d_k, d_v=d_v, tm=tm)
    return h


# ---------------------------------------------------------------------------
# pure-JAX reference (mirrors the kernels' bf16-dot / f32-accumulate math)
# ---------------------------------------------------------------------------

def _ref_linear(x2, w, b):
    return jnp.dot(x2.astype(jnp.bfloat16), w.astype(jnp.bfloat16),
                   preferred_element_type=jnp.float32) + b


def _ref_layernorm(y, g, bta, eps=1e-6):
    mean = jnp.mean(y, axis=-1, keepdims=True)
    yc = y - mean
    var = jnp.mean(yc * yc, axis=-1, keepdims=True)
    return yc * lax.rsqrt(var + eps) * g + bta


def encoder_reference(params, x, *, n_head, d_k, d_v):
    b, s_len, d_model = x.shape
    h = x
    for p in params:
        x2 = h.reshape(b * s_len, d_model)
        qkv = _ref_linear(x2, p["w_qkv"], p["b_qkv"])
        hdk = n_head * d_k
        q = qkv[:, :hdk].reshape(b, s_len, n_head, d_k).transpose(0, 2, 1, 3)
        k = qkv[:, hdk:2 * hdk].reshape(b, s_len, n_head, d_k).transpose(0, 2, 1, 3)
        v = qkv[:, 2 * hdk:].reshape(b, s_len, n_head, d_v).transpose(0, 2, 1, 3)
        scale = 1.0 / float(np.sqrt(d_k))
        s = jnp.einsum("bhqd,bhkd->bhqk",
                       (q * scale).astype(jnp.bfloat16), k.astype(jnp.bfloat16),
                       preferred_element_type=jnp.float32)
        m = jnp.max(s, axis=-1, keepdims=True)
        pexp = jnp.exp(s - m)
        attn = pexp / jnp.sum(pexp, axis=-1, keepdims=True)
        r = jnp.einsum("bhqk,bhkd->bhqd",
                       attn.astype(jnp.bfloat16), v.astype(jnp.bfloat16),
                       preferred_element_type=jnp.float32)
        r = r.transpose(0, 2, 1, 3).reshape(b * s_len, n_head * d_v)
        att = _ref_linear(r, p["w_fc"], p["b_fc"])
        out1 = _ref_layernorm(x2 + att, p["ln1_g"], p["ln1_b"])
        hid = jnp.maximum(_ref_linear(out1, p["w1"], p["b1"]), 0.0)
        ffn = jnp.dot(hid.astype(jnp.bfloat16), p["w2"].astype(jnp.bfloat16),
                      preferred_element_type=jnp.float32) + p["b2"]
        out = _ref_layernorm(out1 + ffn, p["ln2_g"], p["ln2_b"])
        h = out.reshape(b, s_len, d_model)
    return h


# ---------------------------------------------------------------------------
# parameter init (orthogonal, gain=sqrt(2), zero bias  — matches layer_init)
# ---------------------------------------------------------------------------

def init_layer_params(key, n_head, d_k, d_v, d_model, d_inner):
    ortho = jax.nn.initializers.orthogonal(scale=float(np.sqrt(2.0)))
    ks = jax.random.split(key, 6)
    w_q = ortho(ks[0], (d_model, n_head * d_k), jnp.float32)
    w_k = ortho(ks[1], (d_model, n_head * d_k), jnp.float32)
    w_v = ortho(ks[2], (d_model, n_head * d_v), jnp.float32)
    return dict(
        w_qkv=jnp.concatenate([w_q, w_k, w_v], axis=1),
        b_qkv=jnp.zeros((n_head * (2 * d_k + d_v),), jnp.float32),
        w_fc=ortho(ks[3], (n_head * d_v, d_model), jnp.float32),
        b_fc=jnp.zeros((d_model,), jnp.float32),
        w1=ortho(ks[4], (d_model, d_inner), jnp.float32),
        b1=jnp.zeros((d_inner,), jnp.float32),
        w2=ortho(ks[5], (d_inner, d_model), jnp.float32),
        b2=jnp.zeros((d_model,), jnp.float32),
        ln1_g=jnp.ones((d_model,), jnp.float32),
        ln1_b=jnp.zeros((d_model,), jnp.float32),
        ln2_g=jnp.ones((d_model,), jnp.float32),
        ln2_b=jnp.zeros((d_model,), jnp.float32),
    )


if __name__ == "__main__":
    # Module defaults: n_layers=3, n_head=2, d_k=d_v=128, d_model=256, d_inner=1024
    n_layers, n_head, d_k, d_v, d_model, d_inner = 3, 2, 128, 128, 256, 1024
    batch, seq = 2, 8

    key = jax.random.PRNGKey(0)
    kx, kp = jax.random.split(key)
    x = jax.random.normal(kx, (batch, seq, d_model), jnp.float32)
    params = [init_layer_params(k, n_head, d_k, d_v, d_model, d_inner)
              for k in jax.random.split(kp, n_layers)]

    fwd = jax.jit(functools.partial(encoder_forward,
                                    n_head=n_head, d_k=d_k, d_v=d_v, tm=256))
    out = jax.block_until_ready(fwd(params, x))

    ref = encoder_reference(params, x, n_head=n_head, d_k=d_k, d_v=d_v)
    np.testing.assert_allclose(np.asarray(out), np.asarray(ref),
                               rtol=1e-2, atol=1e-2)
    assert out.shape == x.shape and out.dtype == x.dtype
    print("KERNEL_OK")
</pallas_src>

<mosaic_0001>
module attributes {stable_mosaic.version = 11 : i64} {
  func.func @linear_kernel(%arg0: i32, %arg1: memref<16x256xbf16, #tpu.memory_space<vmem>>, %arg2: memref<256x768xbf16, #tpu.memory_space<vmem>>, %arg3: memref<1x768xf32, #tpu.memory_space<vmem>>, %arg4: memref<16x768xf32, #tpu.memory_space<vmem>>) attributes {dimension_semantics = [#tpu.dimension_semantics<parallel>], iteration_bounds = array<i64: 1>, scalar_prefetch = 0 : i64, scratch_operands = 0 : i64, tpu.core_type = #tpu.core_type<tc>, window_params = [{transform_indices = @transform_0, window_bounds = array<i64: 16, 256>}, {pipeline_mode = #tpu.pipeline_mode<synchronous>, transform_indices = @transform_1, window_bounds = array<i64: 256, 768>}, {pipeline_mode = #tpu.pipeline_mode<synchronous>, transform_indices = @transform_2, window_bounds = array<i64: 1, 768>}, {transform_indices = @transform_3, window_bounds = array<i64: 16, 768>}]} {
    %c0 = arith.constant 0 : index
    %c0_0 = arith.constant 0 : index
    %0 = vector.load %arg1[%c0, %c0_0] : memref<16x256xbf16, #tpu.memory_space<vmem>>, vector<16x256xbf16>
    %c0_1 = arith.constant 0 : index
    %c0_2 = arith.constant 0 : index
    %1 = vector.load %arg2[%c0_1, %c0_2] : memref<256x768xbf16, #tpu.memory_space<vmem>>, vector<256x768xbf16>
    %cst = arith.constant dense<0.000000e+00> : vector<16x768xf32>
    %2 = tpu.matmul %0, %1, %cst {dimension_numbers = #tpu.dot_dimension_numbers<[1], [0], [0], [1], [0, 0, 1, 1], [], []>} : vector<16x256xbf16>, vector<256x768xbf16>, vector<16x768xf32> -> vector<16x768xf32>
    %c0_3 = arith.constant 0 : index
    %c0_4 = arith.constant 0 : index
    %3 = vector.load %arg3[%c0_3, %c0_4] : memref<1x768xf32, #tpu.memory_space<vmem>>, vector<1x768xf32>
    %4 = vector.broadcast %3 : vector<1x768xf32> to vector<16x768xf32>
    %5 = arith.addf %2, %4 : vector<16x768xf32>
    %c0_5 = arith.constant 0 : index
    %c0_6 = arith.constant 0 : index
    %6 = vector.load %arg4[%c0_5, %c0_6] : memref<16x768xf32, #tpu.memory_space<vmem>>, vector<16x768xf32>
    tpu.vector_store %arg4[%c0_5, %c0_6], %5 {strides = array<i32>} : memref<16x768xf32, #tpu.memory_space<vmem>>, vector<16x768xf32>,
    return
  }
  func.func @transform_0(%arg0: i32) -> (i32, i32) {
    %c0_i32 = arith.constant 0 : i32
    %c0_i32_0 = arith.constant 0 : i32
    return %arg0, %c0_i32 : i32, i32
  }
  func.func @transform_1(%arg0: i32) -> (i32, i32) {
    %c0_i32 = arith.constant 0 : i32
    %c0_i32_0 = arith.constant 0 : i32
    %c0_i32_1 = arith.constant 0 : i32
    return %c0_i32, %c0_i32_0 : i32, i32
  }
  func.func @transform_2(%arg0: i32) -> (i32, i32) {
    %c0_i32 = arith.constant 0 : i32
    %c0_i32_0 = arith.constant 0 : i32
    %c0_i32_1 = arith.constant 0 : i32
    return %c0_i32, %c0_i32_0 : i32, i32
  }
  func.func @transform_3(%arg0: i32) -> (i32, i32) {
    %c0_i32 = arith.constant 0 : i32
    %c0_i32_0 = arith.constant 0 : i32
    return %arg0, %c0_i32 : i32, i32
  }
}

module attributes {stable_mosaic.version = 11 : i64} {
  func.func @attention_kernel(%arg0: i32, %arg1: memref<1x8x128xbf16, #tpu.memory_space<vmem>>, %arg2: memref<1x8x128xbf16, #tpu.memory_space<vmem>>, %arg3: memref<1x8x128xbf16, #tpu.memory_space<vmem>>, %arg4: memref<1x8x128xf32, #tpu.memory_space<vmem>>) attributes {dimension_semantics = [#tpu.dimension_semantics<parallel>], iteration_bounds = array<i64: 4>, scalar_prefetch = 0 : i64, scratch_operands = 0 : i64, tpu.core_type = #tpu.core_type<tc>, window_params = [{transform_indices = @transform_0, window_bounds = array<i64: 1, 8, 128>}, {transform_indices = @transform_1, window_bounds = array<i64: 1, 8, 128>}, {transform_indices = @transform_2, window_bounds = array<i64: 1, 8, 128>}, {transform_indices = @transform_3, window_bounds = array<i64: 1, 8, 128>}]} {
    %c0 = arith.constant 0 : index
    %c0_0 = arith.constant 0 : index
    %c0_1 = arith.constant 0 : index
    %0 = vector.load %arg1[%c0, %c0_0, %c0_1] : memref<1x8x128xbf16, #tpu.memory_space<vmem>>, vector<1x8x128xbf16>
    %c0_2 = arith.constant 0 : index
    %c0_3 = arith.constant 0 : index
    %c0_4 = arith.constant 0 : index
    %1 = vector.load %arg2[%c0_2, %c0_3, %c0_4] : memref<1x8x128xbf16, #tpu.memory_space<vmem>>, vector<1x8x128xbf16>
    "tpu.trace_start"() <{level = 10 : i32, message = "bqd,bkd->bqk"}> : () -> ()
    %cst = arith.constant dense<0.000000e+00> : vector<1x8x8xf32>
    %2 = tpu.matmul %0, %1, %cst {dimension_numbers = #tpu.dot_dimension_numbers<[2], [2], [1], [1], [0, 0, 0, 1, 1, 1], [0], [0]>} : vector<1x8x128xbf16>, vector<1x8x128xbf16>, vector<1x8x8xf32> -> vector<1x8x8xf32>
    "tpu.trace_stop"() : () -> ()
    %cst_5 = arith.constant dense<0xFF800000> : vector<1x8xf32>
    %3 = vector.multi_reduction <maximumf>, %2, %cst_5 [2] : vector<1x8x8xf32> to vector<1x8xf32>
    %4 = vector.shape_cast %3 : vector<1x8xf32> to vector<1x8x1xf32>
    %5 = vector.broadcast %4 : vector<1x8x1xf32> to vector<1x8x8xf32>
    %6 = arith.subf %2, %5 : vector<1x8x8xf32>
    %7 = math.exp %6 : vector<1x8x8xf32>
    %cst_6 = arith.constant dense<0.000000e+00> : vector<1x8xf32>
    %8 = vector.multi_reduction <add>, %7, %cst_6 [2] : vector<1x8x8xf32> to vector<1x8xf32>
    %9 = vector.shape_cast %8 : vector<1x8xf32> to vector<1x8x1xf32>
    %10 = vector.broadcast %9 : vector<1x8x1xf32> to vector<1x8x8xf32>
    %11 = arith.divf %7, %10 : vector<1x8x8xf32>
    %12 = arith.truncf %11 : vector<1x8x8xf32> to vector<1x8x8xbf16>
    %c0_7 = arith.constant 0 : index
    %c0_8 = arith.constant 0 : index
    %c0_9 = arith.constant 0 : index
    %13 = vector.load %arg3[%c0_7, %c0_8, %c0_9] : memref<1x8x128xbf16, #tpu.memory_space<vmem>>, vector<1x8x128xbf16>
    "tpu.trace_start"() <{level = 10 : i32, message = "bqk,bkd->bqd"}> : () -> ()
    %cst_10 = arith.constant dense<0.000000e+00> : vector<1x8x128xf32>
    %14 = tpu.matmul %12, %13, %cst_10 {dimension_numbers = #tpu.dot_dimension_numbers<[2], [1], [1], [2], [0, 0, 0, 1, 1, 2], [0], [0]>} : vector<1x8x8xbf16>, vector<1x8x128xbf16>, vector<1x8x128xf32> -> vector<1x8x128xf32>
    "tpu.trace_stop"() : () -> ()
    %c0_11 = arith.constant 0 : index
    %c0_12 = arith.constant 0 : index
    %c0_13 = arith.constant 0 : index
    %15 = vector.load %arg4[%c0_11, %c0_12, %c0_13] : memref<1x8x128xf32, #tpu.memory_space<vmem>>, vector<1x8x128xf32>
    tpu.vector_store %arg4[%c0_11, %c0_12, %c0_13], %14 {strides = array<i32>} : memref<1x8x128xf32, #tpu.memory_space<vmem>>, vector<1x8x128xf32>,
    return
  }
  func.func @transform_0(%arg0: i32) -> (i32, i32, i32) {
    %c0_i32 = arith.constant 0 : i32
    %c0_i32_0 = arith.constant 0 : i32
    %c0_i32_1 = arith.constant 0 : i32
    return %arg0, %c0_i32, %c0_i32_0 : i32, i32, i32
  }
  func.func @transform_1(%arg0: i32) -> (i32, i32, i32) {
    %c0_i32 = arith.constant 0 : i32
    %c0_i32_0 = arith.constant 0 : i32
    %c0_i32_1 = arith.constant 0 : i32
    return %arg0, %c0_i32, %c0_i32_0 : i32, i32, i32
  }
  func.func @transform_2(%arg0: i32) -> (i32, i32, i32) {
    %c0_i32 = arith.constant 0 : i32
    %c0_i32_0 = arith.constant 0 : i32
    %c0_i32_1 = arith.constant 0 : i32
    return %arg0, %c0_i32, %c0_i32_0 : i32, i32, i32
  }
  func.func @transform_3(%arg0: i32) -> (i32, i32, i32) {
    %c0_i32 = arith.constant 0 : i32
    %c0_i32_0 = arith.constant 0 : i32
    %c0_i32_1 = arith.constant 0 : i32
    return %arg0, %c0_i32, %c0_i32_0 : i32, i32, i32
  }
}

module attributes {stable_mosaic.version = 11 : i64} {
  func.func @linear_kernel(%arg0: i32, %arg1: memref<16x256xbf16, #tpu.memory_space<vmem>>, %arg2: memref<256x256xbf16, #tpu.memory_space<vmem>>, %arg3: memref<1x256xf32, #tpu.memory_space<vmem>>, %arg4: memref<16x256xf32, #tpu.memory_space<vmem>>) attributes {dimension_semantics = [#tpu.dimension_semantics<parallel>], iteration_bounds = array<i64: 1>, scalar_prefetch = 0 : i64, scratch_operands = 0 : i64, tpu.core_type = #tpu.core_type<tc>, window_params = [{transform_indices = @transform_0, window_bounds = array<i64: 16, 256>}, {pipeline_mode = #tpu.pipeline_mode<synchronous>, transform_indices = @transform_1, window_bounds = array<i64: 256, 256>}, {pipeline_mode = #tpu.pipeline_mode<synchronous>, transform_indices = @transform_2, window_bounds = array<i64: 1, 256>}, {transform_indices = @transform_3, window_bounds = array<i64: 16, 256>}]} {
    %c0 = arith.constant 0 : index
    %c0_0 = arith.constant 0 : index
    %0 = vector.load %arg1[%c0, %c0_0] : memref<16x256xbf16, #tpu.memory_space<vmem>>, vector<16x256xbf16>
    %c0_1 = arith.constant 0 : index
    %c0_2 = arith.constant 0 : index
    %1 = vector.load %arg2[%c0_1, %c0_2] : memref<256x256xbf16, #tpu.memory_space<vmem>>, vector<256x256xbf16>
    %cst = arith.constant dense<0.000000e+00> : vector<16x256xf32>
    %2 = tpu.matmul %0, %1, %cst {dimension_numbers = #tpu.dot_dimension_numbers<[1], [0], [0], [1], [0, 0, 1, 1], [], []>} : vector<16x256xbf16>, vector<256x256xbf16>, vector<16x256xf32> -> vector<16x256xf32>
    %c0_3 = arith.constant 0 : index
    %c0_4 = arith.constant 0 : index
    %3 = vector.load %arg3[%c0_3, %c0_4] : memref<1x256xf32, #tpu.memory_space<vmem>>, vector<1x256xf32>
    %4 = vector.broadcast %3 : vector<1x256xf32> to vector<16x256xf32>
    %5 = arith.addf %2, %4 : vector<16x256xf32>
    %c0_5 = arith.constant 0 : index
    %c0_6 = arith.constant 0 : index
    %6 = vector.load %arg4[%c0_5, %c0_6] : memref<16x256xf32, #tpu.memory_space<vmem>>, vector<16x256xf32>
    tpu.vector_store %arg4[%c0_5, %c0_6], %5 {strides = array<i32>} : memref<16x256xf32, #tpu.memory_space<vmem>>, vector<16x256xf32>,
    return
  }
  func.func @transform_0(%arg0: i32) -> (i32, i32) {
    %c0_i32 = arith.constant 0 : i32
    %c0_i32_0 = arith.constant 0 : i32
    return %arg0, %c0_i32 : i32, i32
  }
  func.func @transform_1(%arg0: i32) -> (i32, i32) {
    %c0_i32 = arith.constant 0 : i32
    %c0_i32_0 = arith.constant 0 : i32
    %c0_i32_1 = arith.constant 0 : i32
    return %c0_i32, %c0_i32_0 : i32, i32
  }
  func.func @transform_2(%arg0: i32) -> (i32, i32) {
    %c0_i32 = arith.constant 0 : i32
    %c0_i32_0 = arith.constant 0 : i32
    %c0_i32_1 = arith.constant 0 : i32
    return %c0_i32, %c0_i32_0 : i32, i32
  }
  func.func @transform_3(%arg0: i32) -> (i32, i32) {
    %c0_i32 = arith.constant 0 : i32
    %c0_i32_0 = arith.constant 0 : i32
    return %arg0, %c0_i32 : i32, i32
  }
}

module attributes {stable_mosaic.version = 11 : i64} {
  func.func @add_layernorm_kernel(%arg0: i32, %arg1: memref<16x256xf32, #tpu.memory_space<vmem>>, %arg2: memref<16x256xf32, #tpu.memory_space<vmem>>, %arg3: memref<1x256xf32, #tpu.memory_space<vmem>>, %arg4: memref<1x256xf32, #tpu.memory_space<vmem>>, %arg5: memref<16x256xf32, #tpu.memory_space<vmem>>) attributes {dimension_semantics = [#tpu.dimension_semantics<parallel>], iteration_bounds = array<i64: 1>, scalar_prefetch = 0 : i64, scratch_operands = 0 : i64, tpu.core_type = #tpu.core_type<tc>, window_params = [{transform_indices = @transform_0, window_bounds = array<i64: 16, 256>}, {transform_indices = @transform_1, window_bounds = array<i64: 16, 256>}, {pipeline_mode = #tpu.pipeline_mode<synchronous>, transform_indices = @transform_2, window_bounds = array<i64: 1, 256>}, {pipeline_mode = #tpu.pipeline_mode<synchronous>, transform_indices = @transform_3, window_bounds = array<i64: 1, 256>}, {transform_indices = @transform_4, window_bounds = array<i64: 16, 256>}]} {
    %c0 = arith.constant 0 : index
    %c0_0 = arith.constant 0 : index
    %0 = vector.load %arg1[%c0, %c0_0] : memref<16x256xf32, #tpu.memory_space<vmem>>, vector<16x256xf32>
    %c0_1 = arith.constant 0 : index
    %c0_2 = arith.constant 0 : index
    %1 = vector.load %arg2[%c0_1, %c0_2] : memref<16x256xf32, #tpu.memory_space<vmem>>, vector<16x256xf32>
    %2 = arith.addf %0, %1 : vector<16x256xf32>
    %cst = arith.constant dense<0.000000e+00> : vector<16xf32>
    %3 = vector.multi_reduction <add>, %2, %cst [1] : vector<16x256xf32> to vector<16xf32>
    %4 = vector.shape_cast %3 : vector<16xf32> to vector<16x1xf32>
    %cst_3 = arith.constant 2.560000e+02 : f32
    %5 = vector.broadcast %cst_3 : f32 to vector<16x1xf32>
    %6 = arith.divf %4, %5 : vector<16x1xf32>
    %7 = vector.broadcast %6 : vector<16x1xf32> to vector<16x256xf32>
    %8 = arith.subf %2, %7 : vector<16x256xf32>
    %9 = arith.mulf %8, %8 : vector<16x256xf32>
    %cst_4 = arith.constant dense<0.000000e+00> : vector<16xf32>
    %10 = vector.multi_reduction <add>, %9, %cst_4 [1] : vector<16x256xf32> to vector<16xf32>
    %11 = vector.shape_cast %10 : vector<16xf32> to vector<16x1xf32>
    %cst_5 = arith.constant 2.560000e+02 : f32
    %12 = vector.broadcast %cst_5 : f32 to vector<16x1xf32>
    %13 = arith.divf %11, %12 : vector<16x1xf32>
    %cst_6 = arith.constant 9.99999997E-7 : f32
    %14 = vector.broadcast %cst_6 : f32 to vector<16x1xf32>
    %15 = arith.addf %13, %14 : vector<16x1xf32>
    %16 = math.rsqrt %15 : vector<16x1xf32>
    %17 = vector.broadcast %16 : vector<16x1xf32> to vector<16x256xf32>
    %18 = arith.mulf %8, %17 : vector<16x256xf32>
    %c0_7 = arith.constant 0 : index
    %c0_8 = arith.constant 0 : index
    %19 = vector.load %arg3[%c0_7, %c0_8] : memref<1x256xf32, #tpu.memory_space<vmem>>, vector<1x256xf32>
    %20 = vector.broadcast %19 : vector<1x256xf32> to vector<16x256xf32>
    %21 = arith.mulf %18, %20 : vector<16x256xf32>
    %c0_9 = arith.constant 0 : index
    %c0_10 = arith.constant 0 : index
    %22 = vector.load %arg4[%c0_9, %c0_10] : memref<1x256xf32, #tpu.memory_space<vmem>>, vector<1x256xf32>
    %23 = vector.broadcast %22 : vector<1x256xf32> to vector<16x256xf32>
    %24 = arith.addf %21, %23 : vector<16x256xf32>
    %c0_11 = arith.constant 0 : index
    %c0_12 = arith.constant 0 : index
    %25 = vector.load %arg5[%c0_11, %c0_12] : memref<16x256xf32, #tpu.memory_space<vmem>>, vector<16x256xf32>
    tpu.vector_store %arg5[%c0_11, %c0_12], %24 {strides = array<i32>} : memref<16x256xf32, #tpu.memory_space<vmem>>, vector<16x256xf32>,
    return
  }
  func.func @transform_0(%arg0: i32) -> (i32, i32) {
    %c0_i32 = arith.constant 0 : i32
    %c0_i32_0 = arith.constant 0 : i32
    return %arg0, %c0_i32 : i32, i32
  }
  func.func @transform_1(%arg0: i32) -> (i32, i32) {
    %c0_i32 = arith.constant 0 : i32
    %c0_i32_0 = arith.constant 0 : i32
    return %arg0, %c0_i32 : i32, i32
  }
  func.func @transform_2(%arg0: i32) -> (i32, i32) {
    %c0_i32 = arith.constant 0 : i32
    %c0_i32_0 = arith.constant 0 : i32
    %c0_i32_1 = arith.constant 0 : i32
    return %c0_i32, %c0_i32_0 : i32, i32
  }
  func.func @transform_3(%arg0: i32) -> (i32, i32) {
    %c0_i32 = arith.constant 0 : i32
    %c0_i32_0 = arith.constant 0 : i32
    %c0_i32_1 = arith.constant 0 : i32
    return %c0_i32, %c0_i32_0 : i32, i32
  }
  func.func @transform_4(%arg0: i32) -> (i32, i32) {
    %c0_i32 = arith.constant 0 : i32
    %c0_i32_0 = arith.constant 0 : i32
    return %arg0, %c0_i32 : i32, i32
  }
}

module attributes {stable_mosaic.version = 11 : i64} {
  func.func @ffn_kernel(%arg0: i32, %arg1: memref<16x256xbf16, #tpu.memory_space<vmem>>, %arg2: memref<256x1024xbf16, #tpu.memory_space<vmem>>, %arg3: memref<1x1024xf32, #tpu.memory_space<vmem>>, %arg4: memref<1024x256xbf16, #tpu.memory_space<vmem>>, %arg5: memref<1x256xf32, #tpu.memory_space<vmem>>, %arg6: memref<16x256xf32, #tpu.memory_space<vmem>>) attributes {dimension_semantics = [#tpu.dimension_semantics<parallel>], iteration_bounds = array<i64: 1>, scalar_prefetch = 0 : i64, scratch_operands = 0 : i64, tpu.core_type = #tpu.core_type<tc>, window_params = [{transform_indices = @transform_0, window_bounds = array<i64: 16, 256>}, {pipeline_mode = #tpu.pipeline_mode<synchronous>, transform_indices = @transform_1, window_bounds = array<i64: 256, 1024>}, {pipeline_mode = #tpu.pipeline_mode<synchronous>, transform_indices = @transform_2, window_bounds = array<i64: 1, 1024>}, {pipeline_mode = #tpu.pipeline_mode<synchronous>, transform_indices = @transform_3, window_bounds = array<i64: 1024, 256>}, {pipeline_mode = #tpu.pipeline_mode<synchronous>, transform_indices = @transform_4, window_bounds = array<i64: 1, 256>}, {transform_indices = @transform_5, window_bounds = array<i64: 16, 256>}]} {
    %c0 = arith.constant 0 : index
    %c0_0 = arith.constant 0 : index
    %0 = vector.load %arg1[%c0, %c0_0] : memref<16x256xbf16, #tpu.memory_space<vmem>>, vector<16x256xbf16>
    %c0_1 = arith.constant 0 : index
    %c0_2 = arith.constant 0 : index
    %1 = vector.load %arg2[%c0_1, %c0_2] : memref<256x1024xbf16, #tpu.memory_space<vmem>>, vector<256x1024xbf16>
    %cst = arith.constant dense<0.000000e+00> : vector<16x1024xf32>
    %2 = tpu.matmul %0, %1, %cst {dimension_numbers = #tpu.dot_dimension_numbers<[1], [0], [0], [1], [0, 0, 1, 1], [], []>} : vector<16x256xbf16>, vector<256x1024xbf16>, vector<16x1024xf32> -> vector<16x1024xf32>
    %c0_3 = arith.constant 0 : index
    %c0_4 = arith.constant 0 : index
    %3 = vector.load %arg3[%c0_3, %c0_4] : memref<1x1024xf32, #tpu.memory_space<vmem>>, vector<1x1024xf32>
    %4 = vector.broadcast %3 : vector<1x1024xf32> to vector<16x1024xf32>
    %5 = arith.addf %2, %4 : vector<16x1024xf32>
    %cst_5 = arith.constant 0.000000e+00 : f32
    %6 = vector.broadcast %cst_5 : f32 to vector<16x1024xf32>
    %7 = arith.maximumf %5, %6 : vector<16x1024xf32>
    %8 = arith.truncf %7 : vector<16x1024xf32> to vector<16x1024xbf16>
    %c0_6 = arith.constant 0 : index
    %c0_7 = arith.constant 0 : index
    %9 = vector.load %arg4[%c0_6, %c0_7] : memref<1024x256xbf16, #tpu.memory_space<vmem>>, vector<1024x256xbf16>
    %cst_8 = arith.constant dense<0.000000e+00> : vector<16x256xf32>
    %10 = tpu.matmul %8, %9, %cst_8 {dimension_numbers = #tpu.dot_dimension_numbers<[1], [0], [0], [1], [0, 0, 1, 1], [], []>} : vector<16x1024xbf16>, vector<1024x256xbf16>, vector<16x256xf32> -> vector<16x256xf32>
    %c0_9 = arith.constant 0 : index
    %c0_10 = arith.constant 0 : index
    %11 = vector.load %arg5[%c0_9, %c0_10] : memref<1x256xf32, #tpu.memory_space<vmem>>, vector<1x256xf32>
    %12 = vector.broadcast %11 : vector<1x256xf32> to vector<16x256xf32>
    %13 = arith.addf %10, %12 : vector<16x256xf32>
    %c0_11 = arith.constant 0 : index
    %c0_12 = arith.constant 0 : index
    %14 = vector.load %arg6[%c0_11, %c0_12] : memref<16x256xf32, #tpu.memory_space<vmem>>, vector<16x256xf32>
    tpu.vector_store %arg6[%c0_11, %c0_12], %13 {strides = array<i32>} : memref<16x256xf32, #tpu.memory_space<vmem>>, vector<16x256xf32>,
    return
  }
  func.func @transform_0(%arg0: i32) -> (i32, i32) {
    %c0_i32 = arith.constant 0 : i32
    %c0_i32_0 = arith.constant 0 : i32
    return %arg0, %c0_i32 : i32, i32
  }
  func.func @transform_1(%arg0: i32) -> (i32, i32) {
    %c0_i32 = arith.constant 0 : i32
    %c0_i32_0 = arith.constant 0 : i32
    %c0_i32_1 = arith.constant 0 : i32
    return %c0_i32, %c0_i32_0 : i32, i32
  }
  func.func @transform_2(%arg0: i32) -> (i32, i32) {
    %c0_i32 = arith.constant 0 : i32
    %c0_i32_0 = arith.constant 0 : i32
    %c0_i32_1 = arith.constant 0 : i32
    return %c0_i32, %c0_i32_0 : i32, i32
  }
  func.func @transform_3(%arg0: i32) -> (i32, i32) {
    %c0_i32 = arith.constant 0 : i32
    %c0_i32_0 = arith.constant 0 : i32
    %c0_i32_1 = arith.constant 0 : i32
    return %c0_i32, %c0_i32_0 : i32, i32
  }
  func.func @transform_4(%arg0: i32) -> (i32, i32) {
    %c0_i32 = arith.constant 0 : i32
    %c0_i32_0 = arith.constant 0 : i32
    %c0_i32_1 = arith.constant 0 : i32
    return %c0_i32, %c0_i32_0 : i32, i32
  }
  func.func @transform_5(%arg0: i32) -> (i32, i32) {
    %c0_i32 = arith.constant 0 : i32
    %c0_i32_0 = arith.constant 0 : i32
    return %arg0, %c0_i32 : i32, i32
  }
}

module attributes {stable_mosaic.version = 11 : i64} {
  func.func @add_layernorm_kernel(%arg0: i32, %arg1: memref<16x256xf32, #tpu.memory_space<vmem>>, %arg2: memref<16x256xf32, #tpu.memory_space<vmem>>, %arg3: memref<1x256xf32, #tpu.memory_space<vmem>>, %arg4: memref<1x256xf32, #tpu.memory_space<vmem>>, %arg5: memref<16x256xf32, #tpu.memory_space<vmem>>) attributes {dimension_semantics = [#tpu.dimension_semantics<parallel>], iteration_bounds = array<i64: 1>, scalar_prefetch = 0 : i64, scratch_operands = 0 : i64, tpu.core_type = #tpu.core_type<tc>, window_params = [{transform_indices = @transform_0, window_bounds = array<i64: 16, 256>}, {transform_indices = @transform_1, window_bounds = array<i64: 16, 256>}, {pipeline_mode = #tpu.pipeline_mode<synchronous>, transform_indices = @transform_2, window_bounds = array<i64: 1, 256>}, {pipeline_mode = #tpu.pipeline_mode<synchronous>, transform_indices = @transform_3, window_bounds = array<i64: 1, 256>}, {transform_indices = @transform_4, window_bounds = array<i64: 16, 256>}]} {
    %c0 = arith.constant 0 : index
    %c0_0 = arith.constant 0 : index
    %0 = vector.load %arg1[%c0, %c0_0] : memref<16x256xf32, #tpu.memory_space<vmem>>, vector<16x256xf32>
    %c0_1 = arith.constant 0 : index
    %c0_2 = arith.constant 0 : index
    %1 = vector.load %arg2[%c0_1, %c0_2] : memref<16x256xf32, #tpu.memory_space<vmem>>, vector<16x256xf32>
    %2 = arith.addf %0, %1 : vector<16x256xf32>
    %cst = arith.constant dense<0.000000e+00> : vector<16xf32>
    %3 = vector.multi_reduction <add>, %2, %cst [1] : vector<16x256xf32> to vector<16xf32>
    %4 = vector.shape_cast %3 : vector<16xf32> to vector<16x1xf32>
    %cst_3 = arith.constant 2.560000e+02 : f32
    %5 = vector.broadcast %cst_3 : f32 to vector<16x1xf32>
    %6 = arith.divf %4, %5 : vector<16x1xf32>
    %7 = vector.broadcast %6 : vector<16x1xf32> to vector<16x256xf32>
    %8 = arith.subf %2, %7 : vector<16x256xf32>
    %9 = arith.mulf %8, %8 : vector<16x256xf32>
    %cst_4 = arith.constant dense<0.000000e+00> : vector<16xf32>
    %10 = vector.multi_reduction <add>, %9, %cst_4 [1] : vector<16x256xf32> to vector<16xf32>
    %11 = vector.shape_cast %10 : vector<16xf32> to vector<16x1xf32>
    %cst_5 = arith.constant 2.560000e+02 : f32
    %12 = vector.broadcast %cst_5 : f32 to vector<16x1xf32>
    %13 = arith.divf %11, %12 : vector<16x1xf32>
    %cst_6 = arith.constant 9.99999997E-7 : f32
    %14 = vector.broadcast %cst_6 : f32 to vector<16x1xf32>
    %15 = arith.addf %13, %14 : vector<16x1xf32>
    %16 = math.rsqrt %15 : vector<16x1xf32>
    %17 = vector.broadcast %16 : vector<16x1xf32> to vector<16x256xf32>
    %18 = arith.mulf %8, %17 : vector<16x256xf32>
    %c0_7 = arith.constant 0 : index
    %c0_8 = arith.constant 0 : index
    %19 = vector.load %arg3[%c0_7, %c0_8] : memref<1x256xf32, #tpu.memory_space<vmem>>, vector<1x256xf32>
    %20 = vector.broadcast %19 : vector<1x256xf32> to vector<16x256xf32>
    %21 = arith.mulf %18, %20 : vector<16x256xf32>
    %c0_9 = arith.constant 0 : index
    %c0_10 = arith.constant 0 : index
    %22 = vector.load %arg4[%c0_9, %c0_10] : memref<1x256xf32, #tpu.memory_space<vmem>>, vector<1x256xf32>
    %23 = vector.broadcast %22 : vector<1x256xf32> to vector<16x256xf32>
    %24 = arith.addf %21, %23 : vector<16x256xf32>
    %c0_11 = arith.constant 0 : index
    %c0_12 = arith.constant 0 : index
    %25 = vector.load %arg5[%c0_11, %c0_12] : memref<16x256xf32, #tpu.memory_space<vmem>>, vector<16x256xf32>
    tpu.vector_store %arg5[%c0_11, %c0_12], %24 {strides = array<i32>} : memref<16x256xf32, #tpu.memory_space<vmem>>, vector<16x256xf32>,
    return
  }
  func.func @transform_0(%arg0: i32) -> (i32, i32) {
    %c0_i32 = arith.constant 0 : i32
    %c0_i32_0 = arith.constant 0 : i32
    return %arg0, %c0_i32 : i32, i32
  }
  func.func @transform_1(%arg0: i32) -> (i32, i32) {
    %c0_i32 = arith.constant 0 : i32
    %c0_i32_0 = arith.constant 0 : i32
    return %arg0, %c0_i32 : i32, i32
  }
  func.func @transform_2(%arg0: i32) -> (i32, i32) {
    %c0_i32 = arith.constant 0 : i32
    %c0_i32_0 = arith.constant 0 : i32
    %c0_i32_1 = arith.constant 0 : i32
    return %c0_i32, %c0_i32_0 : i32, i32
  }
  func.func @transform_3(%arg0: i32) -> (i32, i32) {
    %c0_i32 = arith.constant 0 : i32
    %c0_i32_0 = arith.constant 0 : i32
    %c0_i32_1 = arith.constant 0 : i32
    return %c0_i32, %c0_i32_0 : i32, i32
  }
  func.func @transform_4(%arg0: i32) -> (i32, i32) {
    %c0_i32 = arith.constant 0 : i32
    %c0_i32_0 = arith.constant 0 : i32
    return %arg0, %c0_i32 : i32, i32
  }
}

</mosaic_0001>

<bundles_post_ra>
// kernel: encoder_forward.19
= control target key start
LH: loop header
LB: loop body
LE: loop exit
PB: predicated region body
PF: predicated region fallthrough
CT: control target
= control target key end

     0   :  { %s454_s12 = smov 0   ;;  %s484_s0 = inlined_call_operand.vmem [shape: bf16[4,8,128], index: 0, kind: input, shape index: {}]   ;;  %s485_s1 = inlined_call_operand.vmem [shape: bf16[4,8,128], index: 1, kind: input, shape index: {}]   ;;  %s486_s2 = inlined_call_operand.vmem [shape: bf16[4,8,128], index: 2, kind: input, shape index: {}]   ;;  %s487_s3 = inlined_call_operand.vmem [shape: f32[4,8,128], index: 3, kind: output, shape index: {}]  }
   0x1 LB: > { %s382_s13 = sadd.s32 4294967295, %s430_s12   ;;  %p386_p0 = scmp.ge.s32.totalorder %s430_s12, 1  ;;  %s430_s12 = sphi %s454_s12, %s13_s12  }
   0x2   : > { %p154_p1 = scmp.lt.s32.totalorder %s430_s12, 5 }
   0x4   : > { %p155_p2 = pnand %p386_p0, %p154_p1 }
   0x5   : > { %p184_p3 = scmp.lt.s32.totalorder (!%p155_p2), %s382_s13, 3  ;;  %v432_v0 = vmov (!%p155_p2), 0.0   ;;  %vm433_vm0 = vmmov (!%p155_p2), 0   ;;  %vm243_vm1 = vcmask (!%p155_p2), 64512   ;;  %vm260_vm2 = vcmask (!%p155_p2), 1043456  }
   0x6   : > { %158 = sbr.rel (%p155_p2) target bundleno = 767 (0x2ff), region = 32  ;;  %398 = vmatprep.subr.bf16.mxu0 (!%p155_p2), %v432_v0  ;;  %400 = vmatprep.mubr.msk.bf16.mxu0 (!%p155_p2), %vm433_vm0, %v432_v0 }
   0x7   : > { %404 = vmatprep.subr.bf16.mxu1 (!%p155_p2), %v432_v0  ;;  %406 = vmatprep.mubr.msk.bf16.mxu1 (!%p155_p2), %vm433_vm0, %v432_v0 }
   0xd   : > { %s489_s13 = smov (!%p184_p3, %s382_s13), 3 }
   0xe   : > { %s387_s14 = sshll.u32 %s489_s13, 2  ;;  %s390_s24 = sshll.u32 %s489_s13, 3 }
   0xf   : > { %s191_s17 = scalar_lea.vmem %s485_s1, %s387_s14  ;;  %s187_s20 = scalar_lea.vmem %s484_s0, %s387_s14 }
  0x10   : > { %v202_v1 = vld [vmem:[%s191_s17] sm:$0xf]  ;;  %s195_s23 = scalar_lea.vmem %s486_s2, %s387_s14  ;;  %s199_s27 = scalar_lea.vmem %s487_s3, %s390_s24 }
  0x11   : > { %399 = vmatpush3.bf16.xpose.msra.mxu0 %v202_v1  ;;  %v201_v2 = vld [vmem:[%s187_s20] sm:$0xf] }
  0x12   : > { %v256_v13 = vld [vmem:[%s195_s23] sm:$0xf] }
  0x13   : > { %v262_v14 = vsel %vm260_vm2, %v256_v13, 0 }
  0x14   : > { %405 = vmatpush3.bf16.msra.mxu1 %v262_v14 }
  0x18   : > { %401 = vmatmul.mubr.bf16.vlgmr.msra.gmra.mrb[0].mxu0 %v201_v2 }
  0xeb   : > { %v237_v3 = vpop.f32.mrb[0].mxu0 }
  0xec   : > { %v402_v4 = vpop.f32.mrb[1].mxu0  ;;  %v244_v5 = vsel %vm243_vm1, %v237_v3, -inf }
  0xed   : > { %245 = vmax.xlane.f32.xlu0 %v244_v5  ;;  %v240_v6 = vpop.f32.mrb[2].mxu0 }
  0xee   : > { %v403_v7 = vpop.f32.mrb[3].mxu0 }
 0x17a   : > { %v246_v8 = vpop.xlane.xlu0 %245 }
 0x17b   : > { %v247_v9 = vsub.f32 %v237_v3, %v246_v8 }
 0x17d   : > { %v248_v10 = vmul.f32 1.442695, %v247_v9 }
 0x17f   : > { %420 = vpow2.f32 %v248_v10 }
 0x189   : > { %v421_v11 = vpop.eup %420 }
 0x18a   : > { %v250_v12 = vsel %vm243_vm1, %v421_v11, 0.0 }
 0x18b   : > { %251 = vadd.xlane.f32.xlu0 %v250_v12 }
 0x218   : > { %v252_v15 = vpop.xlane.xlu0 %251 }
 0x219   : > { %422 = vrcp.f32 %v252_v15 }
 0x223   : > { %v423_v16 = vpop.eup %422 }
 0x224   : > { %v254_v17 = vmul.f32 %v423_v16, %v421_v11 }
 0x226   : > { %v255_v18 = vpack.c.bf16 %v254_v17, %v254_v17 }
 0x228   : > { %407 = vmatmul.mubr.msk.bf16.vlgmr.msra.gmra.mrb[0].mxu1 %vm243_vm1, %v255_v18 }
 0x2fb   : > { %v298_v19 = vpop.f32.mrb[0].mxu1 }
 0x2fc   : > { %304 = vst [vmem:[%s199_s27] sm:$0xff] %v298_v19  ;;  %v408_v20 = vpop.f32.mrb[1].mxu1 }
 0x2fd   : > { %v301_v21 = vpop.f32.mrb[2].mxu1 }
 0x2fe   : > { %v409_v22 = vpop.f32.mrb[3].mxu1 }
 0x2ff PF: > { %s13_s12 = sadd.s32 1, %s430_s12  }
 0x300   : > { %p10_p4 = scmp.ge.s32.totalorder %s13_s12, 6  }
 0x302   :  { %12 = sbr.rel (!%p10_p4) target bundleno = 1 (0x1), region = 68 }

// kernel: encoder_forward.18
= control target key start
LH: loop header
LB: loop body
LE: loop exit
PB: predicated region body
PF: predicated region fallthrough
CT: control target
= control target key end

     0   :  { %s1387_s1 = inlined_call_operand.vmem [shape: bf16[256,768], index: 1, kind: input, shape index: {}]   ;;  %s1388_s0 = inlined_call_operand.vmem [shape: bf16[16,256], index: 0, kind: input, shape index: {}]   ;;  %s1389_s2 = inlined_call_operand.vmem [shape: f32[1,768], index: 2, kind: input, shape index: {}]   ;;  %s1390_s3 = inlined_call_operand.vmem [shape: f32[16,768], index: 3, kind: output, shape index: {}]  }
   0x1   :  { %v877_v0 = vld [vmem:[%s1387_s1 + $0x4] ss:$24 sps:$4 sm:$0xff]   ;;  %v879_v1 = vld [vmem:[%s1387_s1] ss:$24 sps:$4 sm:$0xff]   ;;  %v880_v2 = vld [vmem:[%s1387_s1 + $0x34] ss:$24 sps:$4 sm:$0xff]  }
   0x2   :  { %634 = vmatprep.subr.bf16.mxu0 %v877_v0  ;;  %v882_v3 = vld [vmem:[%s1387_s1 + $0x30] ss:$24 sps:$4 sm:$0xff]   ;;  %v883_v4 = vld [vmem:[%s1387_s1 + $0x64] ss:$24 sps:$4 sm:$0xff]   ;;  %v885_v5 = vld [vmem:[%s1387_s1 + $0x60] ss:$24 sps:$4 sm:$0xff]  }
   0x3   :  { %635 = vmatpush1.bf16.msra.mxu0 %v879_v1  ;;  %v886_v6 = vld [vmem:[%s1387_s1 + $0x94] ss:$24 sps:$4 sm:$0xff]   ;;  %v888_v7 = vld [vmem:[%s1387_s1 + $0x90] ss:$24 sps:$4 sm:$0xff]   ;;  %v889_v8 = vld [vmem:[%s1387_s1 + $0xc4] ss:$24 sps:$4 sm:$0xff]  }
   0x4   :  { %636 = vmatprep.subr.bf16.mxu0 %v880_v2  ;;  %v891_v9 = vld [vmem:[%s1387_s1 + $0xc0] ss:$24 sps:$4 sm:$0xff]   ;;  %v892_v10 = vld [vmem:[%s1387_s1 + $0xf4] ss:$24 sps:$4 sm:$0xff]   ;;  %v894_v11 = vld [vmem:[%s1387_s1 + $0xf0] ss:$24 sps:$4 sm:$0xff]  }
   0x5   :  { %v895_v12 = vld [vmem:[%s1387_s1 + $0x124] ss:$24 sps:$4 sm:$0xff]   ;;  %v927_v14 = vld [vmem:[%s1387_s1 + $0x8] ss:$24 sps:$4 sm:$0xff]   ;;  %v898_v17 = vld [vmem:[%s1387_s1 + $0x154] ss:$24 sps:$4 sm:$0xff]  }
   0x6   :  { %v925_v13 = vld [vmem:[%s1387_s1 + $0xc] ss:$24 sps:$4 sm:$0xff]   ;;  %v897_v15 = vld [vmem:[%s1387_s1 + $0x120] ss:$24 sps:$4 sm:$0xff]   ;;  %v934_v18 = vld [vmem:[%s1387_s1 + $0x3c] ss:$24 sps:$4 sm:$0xff]  }
   0x7   :  { %637 = vmatpush1.bf16.msra.mxu0 %v882_v3  ;;  %v1095_v16 = vld [vmem:[%s1388_s0 + $0x4] ss:$8 sps:$4 sm:$0xff]   ;;  %677 = vmatprep.subr.bf16.mxu1 %v925_v13  ;;  %v936_v19 = vld [vmem:[%s1387_s1 + $0x38] ss:$24 sps:$4 sm:$0xff]   ;;  %v942_v23 = vld [vmem:[%s1387_s1 + $0x68] ss:$24 sps:$4 sm:$0xff]  }
   0x8   :  { %638 = vmatprep.subr.bf16.mxu0 %v883_v4  ;;  %678 = vmatpush1.bf16.msra.mxu1 %v927_v14  ;;  %v900_v20 = vld [vmem:[%s1387_s1 + $0x150] ss:$24 sps:$4 sm:$0xff]   ;;  %v901_v21 = vld [vmem:[%s1387_s1 + $0x184] ss:$24 sps:$4 sm:$0xff]   ;;  %v903_v24 = vld [vmem:[%s1387_s1 + $0x180] ss:$24 sps:$4 sm:$0xff]  }
   0x9   :  { %666 = vmatprep.mubr.bf16.mxu0 %v1095_v16  ;;  %709 = vmatprep.mubr.bf16.mxu1 %v1095_v16  ;;  %v940_v22 = vld [vmem:[%s1387_s1 + $0x6c] ss:$24 sps:$4 sm:$0xff]   ;;  %v946_v25 = vld [vmem:[%s1387_s1 + $0x9c] ss:$24 sps:$4 sm:$0xff]   ;;  %v948_v27 = vld [vmem:[%s1387_s1 + $0x98] ss:$24 sps:$4 sm:$0xff]  }
   0xa   :  { %679 = vmatprep.subr.bf16.mxu1 %v934_v18  ;;  %v904_v26 = vld [vmem:[%s1387_s1 + $0x1b4] ss:$24 sps:$4 sm:$0xff]   ;;  %v906_v29 = vld [vmem:[%s1387_s1 + $0x1b0] ss:$24 sps:$4 sm:$0xff]   ;;  %v907_v30 = vld [vmem:[%s1387_s1 + $0x1e4] ss:$24 sps:$4 sm:$0xff]  }
   0xb   :  { %639 = vmatpush1.bf16.msra.mxu0 %v885_v5  ;;  %v952_v28 = vld [vmem:[%s1387_s1 + $0xcc] ss:$24 sps:$4 sm:$0xff]   ;;  %v954_v31 = vld [vmem:[%s1387_s1 + $0xc8] ss:$24 sps:$4 sm:$0xff]   ;;  %v958_v32 = vld [vmem:[%s1387_s1 + $0xfc] ss:$24 sps:$4 sm:$0xff]  }
   0xc   :  { %640 = vmatprep.subr.bf16.mxu0 %v886_v6  ;;  %680 = vmatpush1.bf16.msra.mxu1 %v936_v19  ;;  %v909_v33 = vld [vmem:[%s1387_s1 + $0x1e0] ss:$24 sps:$4 sm:$0xff]   ;;  %v910_v34 = vld [vmem:[%s1387_s1 + $0x214] ss:$24 sps:$4 sm:$0xff]   ;;  %v912_v37 = vld [vmem:[%s1387_s1 + $0x210] ss:$24 sps:$4 sm:$0xff]  }
   0xd   :  { %681 = vmatprep.subr.bf16.mxu1 %v940_v22  ;;  %v960_v35 = vld [vmem:[%s1387_s1 + $0xf8] ss:$24 sps:$4 sm:$0xff]   ;;  %v964_v36 = vld [vmem:[%s1387_s1 + $0x12c] ss:$24 sps:$4 sm:$0xff]   ;;  %v966_v39 = vld [vmem:[%s1387_s1 + $0x128] ss:$24 sps:$4 sm:$0xff]  }
   0xe   :  { %v913_v38 = vld [vmem:[%s1387_s1 + $0x244] ss:$24 sps:$4 sm:$0xff]   ;;  %v915_v41 = vld [vmem:[%s1387_s1 + $0x240] ss:$24 sps:$4 sm:$0xff]   ;;  %v916_v42 = vld [vmem:[%s1387_s1 + $0x274] ss:$24 sps:$4 sm:$0xff]  }
   0xf   :  { %641 = vmatpush1.bf16.msra.mxu0 %v888_v7  ;;  %v970_v40 = vld [vmem:[%s1387_s1 + $0x15c] ss:$24 sps:$4 sm:$0xff]   ;;  %v972_v43 = vld [vmem:[%s1387_s1 + $0x158] ss:$24 sps:$4 sm:$0xff]   ;;  %v976_v44 = vld [vmem:[%s1387_s1 + $0x18c] ss:$24 sps:$4 sm:$0xff]  }
  0x10   :  { %642 = vmatprep.subr.bf16.mxu0 %v889_v8  ;;  %682 = vmatpush1.bf16.msra.mxu1 %v942_v23  ;;  %v918_v45 = vld [vmem:[%s1387_s1 + $0x270] ss:$24 sps:$4 sm:$0xff]   ;;  %v919_v46 = vld [vmem:[%s1387_s1 + $0x2a4] ss:$24 sps:$4 sm:$0xff]   ;;  %v921_v49 = vld [vmem:[%s1387_s1 + $0x2a0] ss:$24 sps:$4 sm:$0xff]  }
  0x11   :  { %683 = vmatprep.subr.bf16.mxu1 %v946_v25  ;;  %v978_v47 = vld [vmem:[%s1387_s1 + $0x188] ss:$24 sps:$4 sm:$0xff]   ;;  %v982_v48 = vld [vmem:[%s1387_s1 + $0x1bc] ss:$24 sps:$4 sm:$0xff]   ;;  %v984_v51 = vld [vmem:[%s1387_s1 + $0x1b8] ss:$24 sps:$4 sm:$0xff]  }
  0x12   :  { %v922_v50 = vld [vmem:[%s1387_s1 + $0x2d4] ss:$24 sps:$4 sm:$0xff]   ;;  %v924_v53 = vld [vmem:[%s1387_s1 + $0x2d0] ss:$24 sps:$4 sm:$0xff]   ;;  %v939_v59 = vld [vmem:[%s1387_s1 + $0x44] ss:$24 sps:$4 sm:$0xff]  }
  0x13   :  { %643 = vmatpush1.bf16.msra.mxu0 %v891_v9  ;;  %v988_v52 = vld [vmem:[%s1387_s1 + $0x1ec] ss:$24 sps:$4 sm:$0xff]   ;;  %v990_v55 = vld [vmem:[%s1387_s1 + $0x1e8] ss:$24 sps:$4 sm:$0xff]   ;;  %v994_v57 = vld [vmem:[%s1387_s1 + $0x21c] ss:$24 sps:$4 sm:$0xff]  }
  0x14   :  { %644 = vmatprep.subr.bf16.mxu0 %v892_v10  ;;  %684 = vmatpush1.bf16.msra.mxu1 %v948_v27  ;;  %v933_v54 = vld [vmem:[%s1387_s1 + $0x14] ss:$24 sps:$4 sm:$0xff]   ;;  %v1219_v56 = vld [vmem:[%s1388_s0] ss:$8 sps:$4 sm:$0xff]   ;;  %v996_v60 = vld [vmem:[%s1387_s1 + $0x218] ss:$24 sps:$4 sm:$0xff]  }
  0x15   :  { %685 = vmatprep.subr.bf16.mxu1 %v952_v28  ;;  %v931_v58 = vld [vmem:[%s1387_s1 + $0x10] ss:$24 sps:$4 sm:$0xff]   ;;  %v1000_v61 = vld [vmem:[%s1387_s1 + $0x24c] ss:$24 sps:$4 sm:$0xff]   ;;  %v937_v62 = vld [vmem:[%s1387_s1 + $0x40] ss:$24 sps:$4 sm:$0xff]  }
  0x16   :  { %v945_v63 = vld [vmem:[%s1387_s1 + $0x74] ss:$24 sps:$4 sm:$0xff]   ;;  %v1002_v0 = vld [vmem:[%s1387_s1 + $0x248] ss:$24 sps:$4 sm:$0xff]   ;;  %v951_v3 = vld [vmem:[%s1387_s1 + $0xa4] ss:$24 sps:$4 sm:$0xff]  }
  0x17   :  { %645 = vmatpush1.bf16.msra.mxu0 %v894_v11  ;;  %v1006_v1 = vld [vmem:[%s1387_s1 + $0x27c] ss:$24 sps:$4 sm:$0xff]   ;;  %v943_v2 = vld [vmem:[%s1387_s1 + $0x70] ss:$24 sps:$4 sm:$0xff]   ;;  %v1012_v5 = vld [vmem:[%s1387_s1 + $0x2ac] ss:$24 sps:$4 sm:$0xff]  }
  0x18   :  { %646 = vmatprep.subr.bf16.mxu0 %v895_v12  ;;  %686 = vmatpush1.bf16.msra.mxu1 %v954_v31  ;;  %v1008_v4 = vld [vmem:[%s1387_s1 + $0x278] ss:$24 sps:$4 sm:$0xff]   ;;  %v957_v7 = vld [vmem:[%s1387_s1 + $0xd4] ss:$24 sps:$4 sm:$0xff]   ;;  %v1014_v8 = vld [vmem:[%s1387_s1 + $0x2a8] ss:$24 sps:$4 sm:$0xff]  }
  0x19   :  { %687 = vmatprep.subr.bf16.mxu1 %v958_v32  ;;  %v949_v6 = vld [vmem:[%s1387_s1 + $0xa0] ss:$24 sps:$4 sm:$0xff]   ;;  %v1018_v9 = vld [vmem:[%s1387_s1 + $0x2dc] ss:$24 sps:$4 sm:$0xff]   ;;  %v955_v10 = vld [vmem:[%s1387_s1 + $0xd0] ss:$24 sps:$4 sm:$0xff]  }
  0x1a   :  { %v963_v11 = vld [vmem:[%s1387_s1 + $0x104] ss:$24 sps:$4 sm:$0xff]   ;;  %v1020_v12 = vld [vmem:[%s1387_s1 + $0x2d8] ss:$24 sps:$4 sm:$0xff]   ;;  %v969_v14 = vld [vmem:[%s1387_s1 + $0x134] ss:$24 sps:$4 sm:$0xff]  }
  0x1b   :  { %647 = vmatpush1.bf16.msra.mxu0 %v897_v15  ;;  %v961_v13 = vld [vmem:[%s1387_s1 + $0x100] ss:$24 sps:$4 sm:$0xff]   ;;  %v967_v15 = vld [vmem:[%s1387_s1 + $0x130] ss:$24 sps:$4 sm:$0xff]   ;;  %v981_v18 = vld [vmem:[%s1387_s1 + $0x194] ss:$24 sps:$4 sm:$0xff]  }
  0x1c   :  { %648 = vmatprep.subr.bf16.mxu0 %v898_v17  ;;  %688 = vmatpush1.bf16.msra.mxu1 %v960_v35  ;;  %v973_v17 = vld [vmem:[%s1387_s1 + $0x160] ss:$24 sps:$4 sm:$0xff]   ;;  %v979_v19 = vld [vmem:[%s1387_s1 + $0x190] ss:$24 sps:$4 sm:$0xff]   ;;  %v993_v22 = vld [vmem:[%s1387_s1 + $0x1f4] ss:$24 sps:$4 sm:$0xff]  }
  0x1d   :  { %689 = vmatprep.subr.bf16.mxu1 %v964_v36  ;;  %v991_v23 = vld [vmem:[%s1387_s1 + $0x1f0] ss:$24 sps:$4 sm:$0xff]   ;;  %v997_v25 = vld [vmem:[%s1387_s1 + $0x220] ss:$24 sps:$4 sm:$0xff]   ;;  %v1011_v28 = vld [vmem:[%s1387_s1 + $0x284] ss:$24 sps:$4 sm:$0xff]  }
  0x1e   :  { %v1003_v27 = vld [vmem:[%s1387_s1 + $0x250] ss:$24 sps:$4 sm:$0xff]   ;;  %v1023_v32 = vld [vmem:[%s1387_s1 + $0x2e4] ss:$24 sps:$4 sm:$0xff]  }
  0x1f   :  { %649 = vmatpush1.bf16.msra.mxu0 %v900_v20  ;;  %v987_v20 = vld [vmem:[%s1387_s1 + $0x1c4] ss:$24 sps:$4 sm:$0xff]   ;;  %v1015_v31 = vld [vmem:[%s1387_s1 + $0x2b0] ss:$24 sps:$4 sm:$0xff]  }
  0x20   :  { %650 = vmatprep.subr.bf16.mxu0 %v901_v21  ;;  %690 = vmatpush1.bf16.msra.mxu1 %v966_v39  ;;  %v985_v21 = vld [vmem:[%s1387_s1 + $0x1c0] ss:$24 sps:$4 sm:$0xff]  }
  0x21   :  { %691 = vmatprep.subr.bf16.mxu1 %v970_v40 }
  0x23   :  { %651 = vmatpush1.bf16.msra.mxu0 %v903_v24  ;;  %v999_v24 = vld [vmem:[%s1387_s1 + $0x224] ss:$24 sps:$4 sm:$0xff]  }
  0x24   :  { %652 = vmatprep.subr.bf16.mxu0 %v904_v26  ;;  %692 = vmatpush1.bf16.msra.mxu1 %v972_v43  ;;  %v1005_v26 = vld [vmem:[%s1387_s1 + $0x254] ss:$24 sps:$4 sm:$0xff]  }
  0x25   :  { %693 = vmatprep.subr.bf16.mxu1 %v976_v44 }
  0x27   :  { %653 = vmatpush1.bf16.msra.mxu0 %v906_v29  ;;  %v1009_v29 = vld [vmem:[%s1387_s1 + $0x280] ss:$24 sps:$4 sm:$0xff]  }
  0x28   :  { %654 = vmatprep.subr.bf16.mxu0 %v907_v30  ;;  %694 = vmatpush1.bf16.msra.mxu1 %v978_v47  ;;  %v1017_v30 = vld [vmem:[%s1387_s1 + $0x2b4] ss:$24 sps:$4 sm:$0xff]  }
  0x29   :  { %695 = vmatprep.subr.bf16.mxu1 %v982_v48 }
  0x2b   :  { %655 = vmatpush1.bf16.msra.mxu0 %v909_v33  ;;  %v1021_v33 = vld [vmem:[%s1387_s1 + $0x2e0] ss:$24 sps:$4 sm:$0xff]  }
  0x2c   :  { %656 = vmatprep.subr.bf16.mxu0 %v910_v34  ;;  %696 = vmatpush1.bf16.msra.mxu1 %v984_v51  ;;  %v114_v34 = vlaneseq }
  0x2d   :  { %697 = vmatprep.subr.bf16.mxu1 %v988_v52 }
  0x2e   :  { %v115_v35 = vshrl.u32 %v114_v34, 7 }
  0x2f   :  { %657 = vmatpush1.bf16.msra.mxu0 %v912_v37  ;;  %v112_v37 = vld [vmem:[%s1389_s2] sm:$0x3f] }
  0x30   :  { %658 = vmatprep.subr.bf16.mxu0 %v913_v38  ;;  %698 = vmatpush1.bf16.msra.mxu1 %v990_v55  ;;  %v116_v36 = vsub.s32 0, %v115_v35  ;;  %v120_v38 = vsub.s32 1, %v115_v35 }
  0x31   :  { %699 = vmatprep.subr.bf16.mxu1 %v994_v57 }
  0x32   :  { %v117_v39 = vrot.slane %v112_v37, %v116_v36  ;;  %v121_v40 = vrot.slane %v112_v37, %v120_v38 }
  0x33   :  { %659 = vmatpush1.bf16.msra.mxu0 %v915_v41 }
  0x34   :  { %660 = vmatprep.subr.bf16.mxu0 %v916_v42  ;;  %700 = vmatpush1.bf16.msra.mxu1 %v996_v60 }
  0x35   :  { %701 = vmatprep.subr.bf16.mxu1 %v1000_v61  ;;  %v132_v61 = vsub.s32 4, %v115_v35 }
  0x37   :  { %661 = vmatpush1.bf16.msra.mxu0 %v918_v45 }
  0x38   :  { %662 = vmatprep.subr.bf16.mxu0 %v919_v46  ;;  %702 = vmatpush1.bf16.msra.mxu1 %v1002_v0 }
  0x39   :  { %703 = vmatprep.subr.bf16.mxu1 %v1006_v1 }
  0x3b   :  { %663 = vmatpush1.bf16.msra.mxu0 %v921_v49  ;;  %v124_v49 = vsub.s32 2, %v115_v35 }
  0x3c   :  { %664 = vmatprep.subr.bf16.mxu0 %v922_v50  ;;  %704 = vmatpush1.bf16.msra.mxu1 %v1008_v4  ;;  %v128_v50 = vsub.s32 3, %v115_v35 }
  0x3d   :  { %705 = vmatprep.subr.bf16.mxu1 %v1012_v5  ;;  %v125_v51 = vrot.slane %v112_v37, %v124_v49 }
  0x3e   :  { %v129_v52 = vrot.slane %v112_v37, %v128_v50 }
  0x3f   :  { %665 = vmatpush1.bf16.msra.mxu0 %v924_v53 }
  0x40   :  { %720 = vmatprep.subr.bf16.mxu0 %v933_v54  ;;  %706 = vmatpush1.bf16.msra.mxu1 %v1014_v8 }
  0x41   :  { %707 = vmatprep.subr.bf16.mxu1 %v1018_v9 }
  0x42   :  { %667 = vmatmul.mubr.bf16.vlgmr.msra.gmra.mrb[0].mxu0 %v1219_v56 }
  0x43   :  { %721 = vmatpush1.bf16.msra.mxu0 %v931_v58  ;;  %752 = vmatprep.mubr.bf16.mxu0 %v1095_v16  ;;  %v975_v16 = vld [vmem:[%s1387_s1 + $0x164] ss:$24 sps:$4 sm:$0xff]  }
  0x44   :  { %722 = vmatprep.subr.bf16.mxu0 %v939_v59  ;;  %708 = vmatpush1.bf16.msra.mxu1 %v1020_v12 }
  0x47   :  { %723 = vmatpush1.bf16.msra.mxu0 %v937_v62  ;;  %710 = vmatmul.mubr.bf16.vlgmr.msra.gmra.mrb[0].mxu1 %v1219_v56  ;;  %v136_v62 = vsub.s32 5, %v115_v35 }
  0x48   :  { %724 = vmatprep.subr.bf16.mxu0 %v945_v63  ;;  %v133_v63 = vrot.slane %v112_v37, %v132_v61 }
  0x49   :  { %v137_v0 = vrot.slane %v112_v37, %v136_v62 }
  0x4b   :  { %725 = vmatpush1.bf16.msra.mxu0 %v943_v2 }
  0x4c   :  { %726 = vmatprep.subr.bf16.mxu0 %v951_v3 }
  0x4f   :  { %727 = vmatpush1.bf16.msra.mxu0 %v949_v6 }
  0x50   :  { %728 = vmatprep.subr.bf16.mxu0 %v957_v7 }
  0x53   :  { %729 = vmatpush1.bf16.msra.mxu0 %v955_v10 }
  0x54   :  { %730 = vmatprep.subr.bf16.mxu0 %v963_v11 }
  0x57   :  { %731 = vmatpush1.bf16.msra.mxu0 %v961_v13 }
  0x58   :  { %732 = vmatprep.subr.bf16.mxu0 %v969_v14 }
  0x5b   :  { %733 = vmatpush1.bf16.msra.mxu0 %v967_v15 }
  0x5c   :  { %734 = vmatprep.subr.bf16.mxu0 %v975_v16 }
  0x5f   :  { %735 = vmatpush1.bf16.msra.mxu0 %v973_v17 }
  0x60   :  { %736 = vmatprep.subr.bf16.mxu0 %v981_v18 }
  0x63   :  { %737 = vmatpush1.bf16.msra.mxu0 %v979_v19 }
  0x64   :  { %738 = vmatprep.subr.bf16.mxu0 %v987_v20 }
  0x67   :  { %739 = vmatpush1.bf16.msra.mxu0 %v985_v21 }
  0x68   :  { %740 = vmatprep.subr.bf16.mxu0 %v993_v22 }
  0x6b   :  { %741 = vmatpush1.bf16.msra.mxu0 %v991_v23 }
  0x6c   :  { %742 = vmatprep.subr.bf16.mxu0 %v999_v24 }
  0x6f   :  { %743 = vmatpush1.bf16.msra.mxu0 %v997_v25 }
  0x70   :  { %744 = vmatprep.subr.bf16.mxu0 %v1005_v26 }
  0x73   :  { %745 = vmatpush1.bf16.msra.mxu0 %v1003_v27 }
  0x74   :  { %746 = vmatprep.subr.bf16.mxu0 %v1011_v28 }
  0x77   :  { %747 = vmatpush1.bf16.msra.mxu0 %v1009_v29 }
  0x78   :  { %748 = vmatprep.subr.bf16.mxu0 %v1017_v30 }
  0x7b   :  { %749 = vmatpush1.bf16.msra.mxu0 %v1015_v31 }
  0x7c   :  { %750 = vmatprep.subr.bf16.mxu0 %v1023_v32 }
  0x7f   :  { %751 = vmatpush1.bf16.msra.mxu0 %v1021_v33 }
  0x82   :  { %753 = vmatmul.mubr.bf16.vlgmr.msra.gmra.mrb[4].mxu0 %v1219_v56 }
 0x115   :  { %v668_v41 = vpop.f32.mrb[0].mxu0 }
 0x116   :  { %v669_v42 = vadd.f32 %v668_v41, %v117_v39  ;;  %v670_v43 = vpop.f32.mrb[1].mxu0 }
 0x117   :  { %v671_v44 = vadd.f32 %v670_v43, %v121_v40  ;;  %v672_v45 = vpop.f32.mrb[2].mxu0 }
 0x118   :  { %763 = vst [vmem:[%s1390_s3] sm:$0xff] %v669_v42  ;;  %v673_v46 = vadd.f32 %v672_v45, %v117_v39  ;;  %v674_v47 = vpop.f32.mrb[3].mxu0 }
 0x119   :  { %764 = vst [vmem:[%s1390_s3 + $0x8] sm:$0xff] %v671_v44  ;;  %v675_v48 = vadd.f32 %v674_v47, %v121_v40 }
 0x11a   :  { %769 = vst [vmem:[%s1390_s3 + $0x30] sm:$0xff] %v673_v46  ;;  %v711_v53 = vpop.f32.mrb[0].mxu1 }
 0x11b   :  { %770 = vst [vmem:[%s1390_s3 + $0x38] sm:$0xff] %v675_v48  ;;  %v712_v54 = vadd.f32 %v711_v53, %v125_v51  ;;  %v713_v55 = vpop.f32.mrb[1].mxu1 }
 0x11c   :  { %v714_v56 = vadd.f32 %v713_v55, %v129_v52  ;;  %v715_v57 = vpop.f32.mrb[2].mxu1 }
 0x11d   :  { %765 = vst [vmem:[%s1390_s3 + $0x10] sm:$0xff] %v712_v54  ;;  %v716_v58 = vadd.f32 %v715_v57, %v125_v51  ;;  %v717_v59 = vpop.f32.mrb[3].mxu1 }
 0x11e   :  { %766 = vst [vmem:[%s1390_s3 + $0x18] sm:$0xff] %v714_v56  ;;  %v718_v60 = vadd.f32 %v717_v59, %v129_v52 }
 0x11f   :  { %771 = vst [vmem:[%s1390_s3 + $0x40] sm:$0xff] %v716_v58 }
 0x120   :  { %772 = vst [vmem:[%s1390_s3 + $0x48] sm:$0xff] %v718_v60 }
 0x155   :  { %v754_v1 = vpop.f32.mrb[4].mxu0 }
 0x156   :  { %v755_v2 = vadd.f32 %v754_v1, %v133_v63  ;;  %v756_v3 = vpop.f32.mrb[5].mxu0 }
 0x157   :  { %v757_v4 = vadd.f32 %v756_v3, %v137_v0  ;;  %v758_v5 = vpop.f32.mrb[6].mxu0 }
 0x158   :  { %767 = vst [vmem:[%s1390_s3 + $0x20] sm:$0xff] %v755_v2  ;;  %v759_v6 = vadd.f32 %v758_v5, %v133_v63  ;;  %v760_v7 = vpop.f32.mrb[7].mxu0 }
 0x159   :  { %768 = vst [vmem:[%s1390_s3 + $0x28] sm:$0xff] %v757_v4  ;;  %v761_v8 = vadd.f32 %v760_v7, %v137_v0 }
 0x15a   :  { %773 = vst [vmem:[%s1390_s3 + $0x50] sm:$0xff] %v759_v6 }
 0x15b   :  { %774 = vst [vmem:[%s1390_s3 + $0x58] sm:$0xff] %v761_v8 }

// kernel: encoder_forward.20
= control target key start
LH: loop header
LB: loop body
LE: loop exit
PB: predicated region body
PF: predicated region fallthrough
CT: control target
= control target key end

     0   :  { %v50_v34 = vlaneseq  ;;  %s503_s1 = inlined_call_operand.vmem [shape: bf16[256,256], index: 1, kind: input, shape index: {}]   ;;  %s504_s0 = inlined_call_operand.vmem [shape: bf16[16,256], index: 0, kind: input, shape index: {}]   ;;  %s505_s2 = inlined_call_operand.vmem [shape: f32[1,256], index: 2, kind: input, shape index: {}]   ;;  %s506_s3 = inlined_call_operand.vmem [shape: f32[16,256], index: 3, kind: output, shape index: {}]  }
   0x1   :  { %v315_v0 = vld [vmem:[%s503_s1 + $0x4] ss:$8 sps:$4 sm:$0xff]   ;;  %v317_v1 = vld [vmem:[%s503_s1] ss:$8 sps:$4 sm:$0xff]   ;;  %v318_v2 = vld [vmem:[%s503_s1 + $0x14] ss:$8 sps:$4 sm:$0xff]  }
   0x2   :  { %230 = vmatprep.subr.bf16.mxu0 %v315_v0  ;;  %v320_v3 = vld [vmem:[%s503_s1 + $0x10] ss:$8 sps:$4 sm:$0xff]   ;;  %v321_v4 = vld [vmem:[%s503_s1 + $0x24] ss:$8 sps:$4 sm:$0xff]   ;;  %v323_v5 = vld [vmem:[%s503_s1 + $0x20] ss:$8 sps:$4 sm:$0xff]  }
   0x3   :  { %231 = vmatpush1.bf16.msra.mxu0 %v317_v1  ;;  %v324_v6 = vld [vmem:[%s503_s1 + $0x34] ss:$8 sps:$4 sm:$0xff]   ;;  %v326_v7 = vld [vmem:[%s503_s1 + $0x30] ss:$8 sps:$4 sm:$0xff]   ;;  %v327_v8 = vld [vmem:[%s503_s1 + $0x44] ss:$8 sps:$4 sm:$0xff]  }
   0x4   :  { %232 = vmatprep.subr.bf16.mxu0 %v318_v2  ;;  %v329_v9 = vld [vmem:[%s503_s1 + $0x40] ss:$8 sps:$4 sm:$0xff]   ;;  %v330_v10 = vld [vmem:[%s503_s1 + $0x54] ss:$8 sps:$4 sm:$0xff]   ;;  %v332_v11 = vld [vmem:[%s503_s1 + $0x50] ss:$8 sps:$4 sm:$0xff]  }
   0x5   :  { %v333_v12 = vld [vmem:[%s503_s1 + $0x64] ss:$8 sps:$4 sm:$0xff]   ;;  %v335_v14 = vld [vmem:[%s503_s1 + $0x60] ss:$8 sps:$4 sm:$0xff]   ;;  %v336_v15 = vld [vmem:[%s503_s1 + $0x74] ss:$8 sps:$4 sm:$0xff]  }
   0x6   :  { %v365_v13 = vld [vmem:[%s504_s0 + $0x4] ss:$8 sps:$4 sm:$0xff]   ;;  %v338_v16 = vld [vmem:[%s503_s1 + $0x70] ss:$8 sps:$4 sm:$0xff]   ;;  %v341_v18 = vld [vmem:[%s503_s1 + $0x80] ss:$8 sps:$4 sm:$0xff]  }
   0x7   :  { %233 = vmatpush1.bf16.msra.mxu0 %v320_v3  ;;  %262 = vmatprep.mubr.bf16.mxu0 %v365_v13  ;;  %v339_v17 = vld [vmem:[%s503_s1 + $0x84] ss:$8 sps:$4 sm:$0xff]   ;;  %v342_v19 = vld [vmem:[%s503_s1 + $0x94] ss:$8 sps:$4 sm:$0xff]   ;;  %v344_v20 = vld [vmem:[%s503_s1 + $0x90] ss:$8 sps:$4 sm:$0xff]  }
   0x8   :  { %234 = vmatprep.subr.bf16.mxu0 %v321_v4  ;;  %v345_v21 = vld [vmem:[%s503_s1 + $0xa4] ss:$8 sps:$4 sm:$0xff]   ;;  %v347_v22 = vld [vmem:[%s503_s1 + $0xa0] ss:$8 sps:$4 sm:$0xff]   ;;  %v348_v23 = vld [vmem:[%s503_s1 + $0xb4] ss:$8 sps:$4 sm:$0xff]  }
   0x9   :  { %v350_v24 = vld [vmem:[%s503_s1 + $0xb0] ss:$8 sps:$4 sm:$0xff]   ;;  %v351_v25 = vld [vmem:[%s503_s1 + $0xc4] ss:$8 sps:$4 sm:$0xff]   ;;  %v353_v26 = vld [vmem:[%s503_s1 + $0xc0] ss:$8 sps:$4 sm:$0xff]  }
   0xa   :  { %v354_v27 = vld [vmem:[%s503_s1 + $0xd4] ss:$8 sps:$4 sm:$0xff]   ;;  %v356_v28 = vld [vmem:[%s503_s1 + $0xd0] ss:$8 sps:$4 sm:$0xff]   ;;  %v357_v29 = vld [vmem:[%s503_s1 + $0xe4] ss:$8 sps:$4 sm:$0xff]  }
   0xb   :  { %235 = vmatpush1.bf16.msra.mxu0 %v323_v5  ;;  %v359_v30 = vld [vmem:[%s503_s1 + $0xe0] ss:$8 sps:$4 sm:$0xff]   ;;  %v360_v31 = vld [vmem:[%s503_s1 + $0xf4] ss:$8 sps:$4 sm:$0xff]   ;;  %v362_v32 = vld [vmem:[%s503_s1 + $0xf0] ss:$8 sps:$4 sm:$0xff]  }
   0xc   :  { %236 = vmatprep.subr.bf16.mxu0 %v324_v6  ;;  %v363_v33 = vld [vmem:[%s504_s0] ss:$8 sps:$4 sm:$0xff]   ;;  %v51_v35 = vshrl.u32 %v50_v34, 7 }
   0xd   :  { %v48_v37 = vld [vmem:[%s505_s2] sm:$0x3] }
   0xe   :  { %v52_v36 = vsub.s32 0, %v51_v35  ;;  %v56_v38 = vsub.s32 1, %v51_v35 }
   0xf   :  { %237 = vmatpush1.bf16.msra.mxu0 %v326_v7 }
  0x10   :  { %238 = vmatprep.subr.bf16.mxu0 %v327_v8  ;;  %v53_v39 = vrot.slane %v48_v37, %v52_v36  ;;  %v57_v40 = vrot.slane %v48_v37, %v56_v38 }
  0x13   :  { %239 = vmatpush1.bf16.msra.mxu0 %v329_v9 }
  0x14   :  { %240 = vmatprep.subr.bf16.mxu0 %v330_v10 }
  0x17   :  { %241 = vmatpush1.bf16.msra.mxu0 %v332_v11 }
  0x18   :  { %242 = vmatprep.subr.bf16.mxu0 %v333_v12 }
  0x1b   :  { %243 = vmatpush1.bf16.msra.mxu0 %v335_v14 }
  0x1c   :  { %244 = vmatprep.subr.bf16.mxu0 %v336_v15 }
  0x1f   :  { %245 = vmatpush1.bf16.msra.mxu0 %v338_v16 }
  0x20   :  { %246 = vmatprep.subr.bf16.mxu0 %v339_v17 }
  0x23   :  { %247 = vmatpush1.bf16.msra.mxu0 %v341_v18 }
  0x24   :  { %248 = vmatprep.subr.bf16.mxu0 %v342_v19 }
  0x27   :  { %249 = vmatpush1.bf16.msra.mxu0 %v344_v20 }
  0x28   :  { %250 = vmatprep.subr.bf16.mxu0 %v345_v21 }
  0x2b   :  { %251 = vmatpush1.bf16.msra.mxu0 %v347_v22 }
  0x2c   :  { %252 = vmatprep.subr.bf16.mxu0 %v348_v23 }
  0x2f   :  { %253 = vmatpush1.bf16.msra.mxu0 %v350_v24 }
  0x30   :  { %254 = vmatprep.subr.bf16.mxu0 %v351_v25 }
  0x33   :  { %255 = vmatpush1.bf16.msra.mxu0 %v353_v26 }
  0x34   :  { %256 = vmatprep.subr.bf16.mxu0 %v354_v27 }
  0x37   :  { %257 = vmatpush1.bf16.msra.mxu0 %v356_v28 }
  0x38   :  { %258 = vmatprep.subr.bf16.mxu0 %v357_v29 }
  0x3b   :  { %259 = vmatpush1.bf16.msra.mxu0 %v359_v30 }
  0x3c   :  { %260 = vmatprep.subr.bf16.mxu0 %v360_v31 }
  0x3f   :  { %261 = vmatpush1.bf16.msra.mxu0 %v362_v32 }
  0x42   :  { %263 = vmatmul.mubr.bf16.vlgmr.msra.gmra.mrb[0].mxu0 %v363_v33 }
 0x115   :  { %v264_v41 = vpop.f32.mrb[0].mxu0 }
 0x116   :  { %v265_v42 = vadd.f32 %v264_v41, %v53_v39  ;;  %v266_v43 = vpop.f32.mrb[1].mxu0 }
 0x117   :  { %v267_v44 = vadd.f32 %v266_v43, %v57_v40  ;;  %v268_v45 = vpop.f32.mrb[2].mxu0 }
 0x118   :  { %273 = vst [vmem:[%s506_s3] sm:$0xff] %v265_v42  ;;  %v269_v46 = vadd.f32 %v268_v45, %v53_v39  ;;  %v270_v47 = vpop.f32.mrb[3].mxu0 }
 0x119   :  { %274 = vst [vmem:[%s506_s3 + $0x8] sm:$0xff] %v267_v44  ;;  %v271_v48 = vadd.f32 %v270_v47, %v57_v40 }
 0x11a   :  { %275 = vst [vmem:[%s506_s3 + $0x10] sm:$0xff] %v269_v46 }
 0x11b   :  { %276 = vst [vmem:[%s506_s3 + $0x18] sm:$0xff] %v271_v48 }

// kernel: encoder_forward.21
= control target key start
LH: loop header
LB: loop body
LE: loop exit
PB: predicated region body
PF: predicated region fallthrough
CT: control target
= control target key end

     0   :  { %v64_v30 = vlaneseq  ;;  %s173_s0 = inlined_call_operand.vmem [shape: f32[16,256], index: 0, kind: input, shape index: {}]   ;;  %s174_s1 = inlined_call_operand.vmem [shape: f32[16,256], index: 1, kind: input, shape index: {}]   ;;  %s175_s2 = inlined_call_operand.vmem [shape: f32[1,256], index: 2, kind: input, shape index: {}]   ;;  %s176_s3 = inlined_call_operand.vmem [shape: f32[1,256], index: 3, kind: input, shape index: {}]   ;;  %s177_s4 = inlined_call_operand.vmem [shape: f32[16,256], index: 4, kind: output, shape index: {}]  }
   0x1   :  { %v17_v0 = vld [vmem:[%s173_s0] sm:$0xff]  ;;  %v18_v1 = vld [vmem:[%s173_s0 + $0x8] sm:$0xff]  ;;  %v19_v5 = vld [vmem:[%s173_s0 + $0x10] sm:$0xff] }
   0x2   :  { %v21_v2 = vld [vmem:[%s174_s1] sm:$0xff]  ;;  %v22_v3 = vld [vmem:[%s174_s1 + $0x8] sm:$0xff]  ;;  %v20_v6 = vld [vmem:[%s173_s0 + $0x18] sm:$0xff]  ;;  %v65_v34 = vshrl.u32 %v64_v30, 7 }
   0x3   :  { %v25_v4 = vadd.f32 %v21_v2, %v17_v0  ;;  %v26_v7 = vadd.f32 %v22_v3, %v18_v1  ;;  %v23_v8 = vld [vmem:[%s174_s1 + $0x10] sm:$0xff]  ;;  %v24_v9 = vld [vmem:[%s174_s1 + $0x18] sm:$0xff]  ;;  %v62_v38 = vld [vmem:[%s175_s2] sm:$0x3] }
   0x4   :  { %v27_v10 = vadd.f32 %v23_v8, %v19_v5  ;;  %v28_v11 = vadd.f32 %v24_v9, %v20_v6  ;;  %v66_v36 = vsub.s32 0, %v65_v34  ;;  %v70_v37 = vsub.s32 1, %v65_v34  ;;  %v78_v39 = vld [vmem:[%s176_s3] sm:$0x3] }
   0x5   :  { %v29_v12 = vadd.f32 %v26_v7, %v25_v4 }
   0x6   :  { %v32_v13 = vadd.f32 %v28_v11, %v27_v10  ;;  %v67_v40 = vrot.slane %v62_v38, %v66_v36  ;;  %v71_v41 = vrot.slane %v62_v38, %v70_v37  ;;  %v83_v43 = vrot.slane %v78_v39, %v66_v36 }
   0x7   :  { %30 = vadd.xlane.f32.xlu0 %v29_v12  ;;  %v87_v44 = vrot.slane %v78_v39, %v70_v37 }
   0xb   :  { %33 = vadd.xlane.f32.xlu0 %v32_v13 }
  0x94   :  { %v31_v14 = vpop.xlane.xlu0 %30 }
  0x95   :  { %v36_v15 = vmul.f32 0.00390625, %v31_v14 }
  0x97   :  { %v38_v16 = vsub.f32 %v25_v4, %v36_v15  ;;  %v39_v17 = vsub.f32 %v26_v7, %v36_v15 }
  0x98   :  { %v34_v18 = vpop.xlane.xlu0 %33 }
  0x99   :  { %v37_v19 = vmul.f32 0.00390625, %v34_v18  ;;  %v42_v20 = vmul.f32 %v38_v16, %v38_v16  ;;  %v43_v21 = vmul.f32 %v39_v17, %v39_v17 }
  0x9b   :  { %v40_v22 = vsub.f32 %v27_v10, %v37_v19  ;;  %v41_v23 = vsub.f32 %v28_v11, %v37_v19  ;;  %v46_v24 = vadd.f32 %v43_v21, %v42_v20 }
  0x9d   :  { %47 = vadd.xlane.f32.xlu1 %v46_v24  ;;  %v44_v25 = vmul.f32 %v40_v22, %v40_v22  ;;  %v45_v26 = vmul.f32 %v41_v23, %v41_v23 }
  0x9f   :  { %v49_v27 = vadd.f32 %v45_v26, %v44_v25 }
  0xa1   :  { %50 = vadd.xlane.f32.xlu1 %v49_v27 }
 0x12a   :  { %v48_v28 = vpop.xlane.xlu1 %47 }
 0x12b   :  { %v52_v29 = vmul.f32 0.00390625, %v48_v28 }
 0x12d   :  { %v54_v31 = vadd.f32 1e-06, %v52_v29 }
 0x12e   :  { %v51_v32 = vpop.xlane.xlu1 %50 }
 0x12f   :  { %102 = vrsqrt.f32 %v54_v31  ;;  %v53_v33 = vmul.f32 0.00390625, %v51_v32 }
 0x131   :  { %v55_v35 = vadd.f32 1e-06, %v53_v33 }
 0x133   :  { %104 = vrsqrt.f32 %v55_v35 }
 0x139   :  { %v103_v42 = vpop.eup %102 }
 0x13a   :  { %v58_v45 = vmul.f32 %v103_v42, %v38_v16  ;;  %v59_v46 = vmul.f32 %v103_v42, %v39_v17 }
 0x13c   :  { %v74_v47 = vmul.f32 %v67_v40, %v58_v45  ;;  %v75_v48 = vmul.f32 %v71_v41, %v59_v46 }
 0x13d   :  { %v105_v49 = vpop.eup %104 }
 0x13e   :  { %v90_v50 = vadd.f32 %v83_v43, %v74_v47  ;;  %v91_v51 = vadd.f32 %v87_v44, %v75_v48  ;;  %v60_v52 = vmul.f32 %v105_v49, %v40_v22  ;;  %v61_v53 = vmul.f32 %v105_v49, %v41_v23 }
 0x140   :  { %94 = vst [vmem:[%s177_s4] sm:$0xff] %v90_v50  ;;  %95 = vst [vmem:[%s177_s4 + $0x8] sm:$0xff] %v91_v51  ;;  %v76_v54 = vmul.f32 %v67_v40, %v60_v52  ;;  %v77_v55 = vmul.f32 %v71_v41, %v61_v53 }
 0x142   :  { %v92_v56 = vadd.f32 %v83_v43, %v76_v54  ;;  %v93_v57 = vadd.f32 %v87_v44, %v77_v55 }
 0x144   :  { %96 = vst [vmem:[%s177_s4 + $0x10] sm:$0xff] %v92_v56  ;;  %97 = vst [vmem:[%s177_s4 + $0x18] sm:$0xff] %v93_v57 }

// kernel: encoder_forward.35
= control target key start
LH: loop header
LB: loop body
LE: loop exit
PB: predicated region body
PF: predicated region fallthrough
CT: control target
= control target key end

     0   :  { %s216_s0 = inlined_call_operand.vmem [shape: f32[16,256], index: 0, kind: input, shape index: {}]   ;;  %s217_s1 = inlined_call_operand.vmem [shape: f32[16,256], index: 1, kind: input, shape index: {}]   ;;  %s218_s2 = inlined_call_operand.vmem [shape: f32[1,256], index: 2, kind: input, shape index: {}]   ;;  %s219_s3 = inlined_call_operand.vmem [shape: f32[1,256], index: 3, kind: input, shape index: {}]   ;;  %s220_s4 = inlined_call_operand.hbm [shape: f32[16,256], index: 4, kind: output, shape index: {}]  }
   0x1   :  { %v18_v0 = vld [vmem:[%s216_s0] sm:$0xff]  ;;  %v19_v1 = vld [vmem:[%s216_s0 + $0x8] sm:$0xff]  ;;  %v20_v5 = vld [vmem:[%s216_s0 + $0x10] sm:$0xff] }
   0x2   :  { %v22_v2 = vld [vmem:[%s217_s1] sm:$0xff]  ;;  %v23_v3 = vld [vmem:[%s217_s1 + $0x8] sm:$0xff]  ;;  %v21_v6 = vld [vmem:[%s216_s0 + $0x18] sm:$0xff] }
   0x3   :  { %v26_v4 = vadd.f32 %v22_v2, %v18_v0  ;;  %v27_v7 = vadd.f32 %v23_v3, %v19_v1  ;;  %v24_v8 = vld [vmem:[%s217_s1 + $0x10] sm:$0xff]  ;;  %v25_v9 = vld [vmem:[%s217_s1 + $0x18] sm:$0xff] }
   0x4   :  { %9 = vsyncpa [#allocation3], 0  ;;  %v28_v10 = vadd.f32 %v24_v8, %v20_v5  ;;  %v29_v11 = vadd.f32 %v25_v9, %v21_v6  ;;  %v65_v30 = vlaneseq  ;;  %v63_v38 = vld [vmem:[%s218_s2] sm:$0x3]  ;;  %s146_s7 = smov [#allocation2]  }
   0x5   :  { %v30_v12 = vadd.f32 %v27_v7, %v26_v4  ;;  %v79_v39 = vld [vmem:[%s219_s3] sm:$0x3]  ;;  %s104_s2 = sshll.u32 %s146_s7, 4  ;;  %s105_s2 = int_to_ptr.vmem [resolvable:$true] %s104_s2 }
   0x6   :  { %v33_v13 = vadd.f32 %v29_v11, %v28_v10  ;;  %v66_v34 = vshrl.u32 %v65_v30, 7  ;;  %s122_s3 = scalar_lea.vmem %s105_s2, 512  ;;  %p127_p1 = scmp.lt.s32.totalorder %s105_s2, %s105_s2 }
   0x7   :  { %31 = vadd.xlane.f32.xlu0 %v30_v12  ;;  %p123_p0 = scmp.ne.s32.totalorder %s105_s2, %s122_s3  ;;  %p128_p2 = scmp.lt.s32.totalorder %s122_s3, %s122_s3 }
   0x8   :  { %v67_v36 = vsub.s32 0, %v66_v34  ;;  %v71_v37 = vsub.s32 1, %v66_v34 }
   0x9   :  { %p129_p3 = por %p128_p2, %p127_p1 }
   0xa   :  { %v68_v40 = vrot.slane %v63_v38, %v67_v36  ;;  %v72_v41 = vrot.slane %v63_v38, %v71_v37  ;;  %v84_v45 = vrot.slane %v79_v39, %v67_v36  ;;  %v88_v46 = vrot.slane %v79_v39, %v71_v37 }
   0xb   :  { %34 = vadd.xlane.f32.xlu0 %v33_v13  ;;  %p130_p4 = pnand %p129_p3, %p123_p0 }
  0x94   :  { %v32_v14 = vpop.xlane.xlu0 %31 }
  0x95   :  { %v37_v15 = vmul.f32 0.00390625, %v32_v14 }
  0x97   :  { %v39_v16 = vsub.f32 %v26_v4, %v37_v15  ;;  %v40_v17 = vsub.f32 %v27_v7, %v37_v15 }
  0x98   :  { %v35_v18 = vpop.xlane.xlu0 %34 }
  0x99   :  { %v38_v19 = vmul.f32 0.00390625, %v35_v18  ;;  %v43_v20 = vmul.f32 %v39_v16, %v39_v16  ;;  %v44_v21 = vmul.f32 %v40_v17, %v40_v17 }
  0x9b   :  { %v41_v22 = vsub.f32 %v28_v10, %v38_v19  ;;  %v42_v23 = vsub.f32 %v29_v11, %v38_v19  ;;  %v47_v24 = vadd.f32 %v44_v21, %v43_v20 }
  0x9d   :  { %48 = vadd.xlane.f32.xlu1 %v47_v24  ;;  %v45_v25 = vmul.f32 %v41_v22, %v41_v22  ;;  %v46_v26 = vmul.f32 %v42_v23, %v42_v23 }
  0x9f   :  { %v50_v27 = vadd.f32 %v46_v26, %v45_v25 }
  0xa1   :  { %51 = vadd.xlane.f32.xlu1 %v50_v27 }
 0x12a   :  { %v49_v28 = vpop.xlane.xlu1 %48 }
 0x12b   :  { %v53_v29 = vmul.f32 0.00390625, %v49_v28 }
 0x12d   :  { %v55_v31 = vadd.f32 1e-06, %v53_v29 }
 0x12e   :  { %v52_v32 = vpop.xlane.xlu1 %51 }
 0x12f   :  { %118 = vrsqrt.f32 %v55_v31  ;;  %v54_v33 = vmul.f32 0.00390625, %v52_v32 }
 0x131   :  { %v56_v35 = vadd.f32 1e-06, %v54_v33 }
 0x133   :  { %120 = vrsqrt.f32 %v56_v35 }
 0x139   :  { %v119_v42 = vpop.eup %118 }
 0x13a   :  { %v59_v43 = vmul.f32 %v119_v42, %v39_v16  ;;  %v60_v44 = vmul.f32 %v119_v42, %v40_v17 }
 0x13c   :  { %v75_v47 = vmul.f32 %v68_v40, %v59_v43  ;;  %v76_v48 = vmul.f32 %v72_v41, %v60_v44 }
 0x13d   :  { %v121_v49 = vpop.eup %120 }
 0x13e   :  { %v61_v50 = vmul.f32 %v121_v49, %v41_v22  ;;  %v62_v51 = vmul.f32 %v121_v49, %v42_v23  ;;  %v91_v52 = vadd.f32 %v84_v45, %v75_v47  ;;  %v92_v53 = vadd.f32 %v88_v46, %v76_v48 }
 0x140   :  { %v77_v54 = vmul.f32 %v68_v40, %v61_v50  ;;  %v78_v55 = vmul.f32 %v72_v41, %v62_v51  ;;  %95 = vst [vmem:[#allocation2] sm:$0xff] %v91_v52  ;;  %96 = vst [vmem:[#allocation2 + $0x8] sm:$0xff] %v92_v53 }
 0x142   :  { %v93_v56 = vadd.f32 %v84_v45, %v77_v54  ;;  %v94_v57 = vadd.f32 %v88_v46, %v78_v55 }
 0x144   :  { %97 = vst [vmem:[#allocation2 + $0x10] sm:$0xff] %v93_v56  ;;  %98 = vst [vmem:[#allocation2 + $0x18] sm:$0xff] %v94_v57 }
 0x145   :  { %133 = shalt.err (!%p130_p4)
}
 0x146   :  { %s134_s10 = scalar_lea.hbm %s220_s4, 512 }
 0x147   :  { %p135_p5 = scmp.ne.s32.totalorder %s220_s4, %s134_s10  ;;  %p138_p6 = scmp.lt.u32.totalorder %s134_s10, %s220_s4 }
 0x149   :  { %p140_p7 = pnand %p138_p6, %p135_p5 }
 0x14b   :  { %143 = shalt.err (!%p140_p7)
}
 0x14c   :  { %s147_s15 = smov 256   ;;  %s148_s16 = smov 16  }
 0x14d   :  { %110 = dma.vmem_to_hbm [thread:$0]  %s105_s2, 512, %s220_s4, [#allocation3], %s147_s15, %s147_s15, %s148_s16  }
 0x14e   :  { %144 = dma.done.wait [#allocation3], 512  }
 0x14f   :  { %145 = vsyncadd [#allocation3], 4294966784 }
 0x150   :  { %114 = vsyncpa [#allocation3], 1 }

// kernel: encoder_forward.22
= control target key start
LH: loop header
LB: loop body
LE: loop exit
PB: predicated region body
PF: predicated region fallthrough
CT: control target
= control target key end

     0   :  { %s3329_s1 = inlined_call_operand.vmem [shape: bf16[256,1024], index: 1, kind: input, shape index: {}]   ;;  %s3330_s0 = inlined_call_operand.vmem [shape: bf16[16,256], index: 0, kind: input, shape index: {}]   ;;  %s3331_s3 = inlined_call_operand.vmem [shape: bf16[1024,256], index: 3, kind: input, shape index: {}]   ;;  %s3332_s2 = inlined_call_operand.vmem [shape: f32[1,1024], index: 2, kind: input, shape index: {}]   ;;  %s3333_s4 = inlined_call_operand.vmem [shape: f32[1,256], index: 4, kind: input, shape index: {}]   ;;  %s3334_s5 = inlined_call_operand.vmem [shape: f32[16,256], index: 5, kind: output, shape index: {}]  }
   0x1   :  { %v22_v0 = vld [vmem:[%s3329_s1] sm:$0xff] }
   0x2   :  { %v26_v1 = vld [vmem:[%s3329_s1 + $0x20] sm:$0xff] }
   0x3   :  { %v30_v2 = vld [vmem:[%s3329_s1 + $0x40] sm:$0xff]  ;;  %v2001_v3 = vcombine.high %v22_v0, %v26_v1  ;;  %v2000_v4 = vcombine.low %v22_v0, %v26_v1  ;;  %v23_v0 = vld [vmem:[%s3329_s1 + $0x8] sm:$0xff] }
   0x4   :  { %v34_v5 = vld [vmem:[%s3329_s1 + $0x60] sm:$0xff]  ;;  %v27_v1 = vld [vmem:[%s3329_s1 + $0x28] sm:$0xff] }
   0x5   :  { %v2009_v6 = vcombine.high %v30_v2, %v34_v5  ;;  %v38_v7 = vld [vmem:[%s3329_s1 + $0x80] sm:$0xff]  ;;  %842 = vmatprep.subr.bf16.mxu1 %v2001_v3  ;;  %v2008_v9 = vcombine.low %v30_v2, %v34_v5  ;;  %v2003_v3 = vcombine.high %v23_v0, %v27_v1  ;;  %v35_v5 = vld [vmem:[%s3329_s1 + $0x68] sm:$0xff] }
   0x6   :  { %v42_v8 = vld [vmem:[%s3329_s1 + $0xa0] sm:$0xff]  ;;  %843 = vmatpush1.bf16.msra.mxu1 %v2000_v4  ;;  %v31_v4 = vld [vmem:[%s3329_s1 + $0x48] sm:$0xff] }
   0x7   :  { %844 = vmatprep.subr.bf16.mxu1 %v2009_v6  ;;  %v2017_v10 = vcombine.high %v38_v7, %v42_v8  ;;  %v46_v11 = vld [vmem:[%s3329_s1 + $0xc0] sm:$0xff]  ;;  %v2016_v13 = vcombine.low %v38_v7, %v42_v8  ;;  %v2002_v7 = vcombine.low %v23_v0, %v27_v1  ;;  %v2011_v8 = vcombine.high %v31_v4, %v35_v5 }
   0x8   :  { %v50_v12 = vld [vmem:[%s3329_s1 + $0xe0] sm:$0xff] }
   0x9   :  { %v2025_v14 = vcombine.high %v46_v11, %v50_v12  ;;  %v54_v15 = vld [vmem:[%s3329_s1 + $0x100] sm:$0xff]  ;;  %v2024_v18 = vcombine.low %v46_v11, %v50_v12  ;;  %v2010_v11 = vcombine.low %v31_v4, %v35_v5 }
   0xa   :  { %845 = vmatpush1.bf16.msra.mxu1 %v2008_v9  ;;  %v58_v16 = vld [vmem:[%s3329_s1 + $0x120] sm:$0xff]  ;;  %v39_v9 = vld [vmem:[%s3329_s1 + $0x88] sm:$0xff] }
   0xb   :  { %846 = vmatprep.subr.bf16.mxu1 %v2017_v10  ;;  %v2530_v17 = vld [vmem:[%s3330_s0 + $0x4] ss:$8 sps:$4 sm:$0xff]   ;;  %v2033_v19 = vcombine.high %v54_v15, %v58_v16  ;;  %v2032_v22 = vcombine.low %v54_v15, %v58_v16  ;;  %v2614_v6 = vld [vmem:[%s3330_s0] ss:$8 sps:$4 sm:$0xff]  }
   0xc   :  { %874 = vmatprep.mubr.bf16.mxu1 %v2530_v17  ;;  %v62_v20 = vld [vmem:[%s3329_s1 + $0x140] sm:$0xff]  ;;  %v43_v10 = vld [vmem:[%s3329_s1 + $0xa8] sm:$0xff] }
   0xd   :  { %v66_v21 = vld [vmem:[%s3329_s1 + $0x160] sm:$0xff]  ;;  %v2019_v12 = vcombine.high %v39_v9, %v43_v10  ;;  %v2018_v15 = vcombine.low %v39_v9, %v43_v10  ;;  %v143_v9 = vld [vmem:[%s3329_s1 + $0x3c8] sm:$0xff] }
   0xe   :  { %847 = vmatpush1.bf16.msra.mxu1 %v2016_v13  ;;  %v2041_v23 = vcombine.high %v62_v20, %v66_v21  ;;  %v70_v24 = vld [vmem:[%s3329_s1 + $0x180] sm:$0xff]  ;;  %v2040_v26 = vcombine.low %v62_v20, %v66_v21  ;;  %v47_v13 = vld [vmem:[%s3329_s1 + $0xc8] sm:$0xff] }
   0xf   :  { %848 = vmatprep.subr.bf16.mxu1 %v2025_v14  ;;  %v74_v25 = vld [vmem:[%s3329_s1 + $0x1a0] sm:$0xff]  ;;  %v51_v14 = vld [vmem:[%s3329_s1 + $0xe8] sm:$0xff] }
  0x10   :  { %v2049_v27 = vcombine.high %v70_v24, %v74_v25  ;;  %v78_v28 = vld [vmem:[%s3329_s1 + $0x1c0] sm:$0xff]  ;;  %v2048_v30 = vcombine.low %v70_v24, %v74_v25  ;;  %v2027_v16 = vcombine.high %v47_v13, %v51_v14  ;;  %v2026_v20 = vcombine.low %v47_v13, %v51_v14  ;;  %v147_v10 = vld [vmem:[%s3329_s1 + $0x3e8] sm:$0xff] }
  0x11   :  { %v82_v29 = vld [vmem:[%s3329_s1 + $0x1e0] sm:$0xff] }
  0x12   :  { %849 = vmatpush1.bf16.msra.mxu1 %v2024_v18  ;;  %v2057_v31 = vcombine.high %v78_v28, %v82_v29  ;;  %v86_v32 = vld [vmem:[%s3329_s1 + $0x200] sm:$0xff]  ;;  %v2056_v34 = vcombine.low %v78_v28, %v82_v29  ;;  %v55_v18 = vld [vmem:[%s3329_s1 + $0x108] sm:$0xff] }
  0x13   :  { %850 = vmatprep.subr.bf16.mxu1 %v2033_v19  ;;  %v90_v33 = vld [vmem:[%s3329_s1 + $0x220] sm:$0xff]  ;;  %v59_v19 = vld [vmem:[%s3329_s1 + $0x128] sm:$0xff] }
  0x14   :  { %v2065_v35 = vcombine.high %v86_v32, %v90_v33  ;;  %v94_v36 = vld [vmem:[%s3329_s1 + $0x240] sm:$0xff]  ;;  %v2064_v38 = vcombine.low %v86_v32, %v90_v33  ;;  %v2035_v21 = vcombine.high %v55_v18, %v59_v19  ;;  %v2034_v24 = vcombine.low %v55_v18, %v59_v19 }
  0x15   :  { %v98_v37 = vld [vmem:[%s3329_s1 + $0x260] sm:$0xff]  ;;  %v2123_v19 = vcombine.high %v143_v9, %v147_v10 }
  0x16   :  { %851 = vmatpush1.bf16.msra.mxu1 %v2032_v22  ;;  %v2073_v39 = vcombine.high %v94_v36, %v98_v37  ;;  %v102_v40 = vld [vmem:[%s3329_s1 + $0x280] sm:$0xff]  ;;  %v2072_v42 = vcombine.low %v94_v36, %v98_v37  ;;  %v63_v22 = vld [vmem:[%s3329_s1 + $0x148] sm:$0xff] }
  0x17   :  { %852 = vmatprep.subr.bf16.mxu1 %v2041_v23  ;;  %v106_v41 = vld [vmem:[%s3329_s1 + $0x2a0] sm:$0xff]  ;;  %v67_v23 = vld [vmem:[%s3329_s1 + $0x168] sm:$0xff] }
  0x18   :  { %v2081_v43 = vcombine.high %v102_v40, %v106_v41  ;;  %v110_v44 = vld [vmem:[%s3329_s1 + $0x2c0] sm:$0xff]  ;;  %v2080_v46 = vcombine.low %v102_v40, %v106_v41  ;;  %v2043_v25 = vcombine.high %v63_v22, %v67_v23  ;;  %v2042_v28 = vcombine.low %v63_v22, %v67_v23  ;;  %v32_v22 = vld [vmem:[%s3329_s1 + $0x50] sm:$0xff] }
  0x19   :  { %v114_v45 = vld [vmem:[%s3329_s1 + $0x2e0] sm:$0xff]  ;;  %v36_v23 = vld [vmem:[%s3329_s1 + $0x70] sm:$0xff] }
  0x1a   :  { %853 = vmatpush1.bf16.msra.mxu1 %v2040_v26  ;;  %v2089_v47 = vcombine.high %v110_v44, %v114_v45  ;;  %v118_v48 = vld [vmem:[%s3329_s1 + $0x300] sm:$0xff]  ;;  %v2088_v50 = vcombine.low %v110_v44, %v114_v45  ;;  %v71_v26 = vld [vmem:[%s3329_s1 + $0x188] sm:$0xff] }
  0x1b   :  { %854 = vmatprep.subr.bf16.mxu1 %v2049_v27  ;;  %v122_v49 = vld [vmem:[%s3329_s1 + $0x320] sm:$0xff]  ;;  %v75_v27 = vld [vmem:[%s3329_s1 + $0x1a8] sm:$0xff] }
  0x1c   :  { %v2097_v51 = vcombine.high %v118_v48, %v122_v49  ;;  %v126_v52 = vld [vmem:[%s3329_s1 + $0x340] sm:$0xff]  ;;  %v2096_v54 = vcombine.low %v118_v48, %v122_v49  ;;  %v2051_v29 = vcombine.high %v71_v26, %v75_v27  ;;  %v2050_v32 = vcombine.low %v71_v26, %v75_v27  ;;  %v111_v48 = vld [vmem:[%s3329_s1 + $0x2c8] sm:$0xff] }
  0x1d   :  { %v130_v53 = vld [vmem:[%s3329_s1 + $0x360] sm:$0xff]  ;;  %v115_v49 = vld [vmem:[%s3329_s1 + $0x2e8] sm:$0xff] }
  0x1e   :  { %855 = vmatpush1.bf16.msra.mxu1 %v2048_v30  ;;  %v2105_v55 = vcombine.high %v126_v52, %v130_v53  ;;  %v134_v56 = vld [vmem:[%s3329_s1 + $0x380] sm:$0xff]  ;;  %v2104_v58 = vcombine.low %v126_v52, %v130_v53  ;;  %v79_v30 = vld [vmem:[%s3329_s1 + $0x1c8] sm:$0xff] }
  0x1f   :  { %856 = vmatprep.subr.bf16.mxu1 %v2057_v31  ;;  %v138_v57 = vld [vmem:[%s3329_s1 + $0x3a0] sm:$0xff]  ;;  %v83_v31 = vld [vmem:[%s3329_s1 + $0x1e8] sm:$0xff] }
  0x20   :  { %v2113_v59 = vcombine.high %v134_v56, %v138_v57  ;;  %v142_v60 = vld [vmem:[%s3329_s1 + $0x3c0] sm:$0xff]  ;;  %v2112_v62 = vcombine.low %v134_v56, %v138_v57  ;;  %v2059_v33 = vcombine.high %v79_v30, %v83_v31  ;;  %v2058_v36 = vcombine.low %v79_v30, %v83_v31 }
  0x21   :  { %v146_v61 = vld [vmem:[%s3329_s1 + $0x3e0] sm:$0xff]  ;;  %v2091_v57 = vcombine.high %v111_v48, %v115_v49  ;;  %v2013_v31 = vcombine.high %v32_v22, %v36_v23 }
  0x22   :  { %857 = vmatpush1.bf16.msra.mxu1 %v2056_v34  ;;  %v2121_v63 = vcombine.high %v142_v60, %v146_v61  ;;  %v2120_v2 = vcombine.low %v142_v60, %v146_v61  ;;  %v87_v34 = vld [vmem:[%s3329_s1 + $0x208] sm:$0xff] }
  0x23   :  { %858 = vmatprep.subr.bf16.mxu1 %v2065_v35  ;;  %v91_v35 = vld [vmem:[%s3329_s1 + $0x228] sm:$0xff] }
  0x24   :  { %v2067_v37 = vcombine.high %v87_v34, %v91_v35  ;;  %v2275_v40 = vld [vmem:[%s3331_s3 + $0x4] ss:$8 sps:$4 sm:$0xff]   ;;  %v2066_v41 = vcombine.low %v87_v34, %v91_v35  ;;  %v2277_v44 = vld [vmem:[%s3331_s3] ss:$8 sps:$4 sm:$0xff]   ;;  %v2012_v35 = vcombine.low %v32_v22, %v36_v23  ;;  %v120_v23 = vld [vmem:[%s3329_s1 + $0x310] sm:$0xff] }
  0x25   :  { %1818 = vmatprep.subr.bf16.mxu0 %v2275_v40  ;;  %v2281_v52 = vld [vmem:[%s3331_s3 + $0x24] ss:$8 sps:$4 sm:$0xff]   ;;  %v2283_v56 = vld [vmem:[%s3331_s3 + $0x20] ss:$8 sps:$4 sm:$0xff]   ;;  %v2308_v40 = vld [vmem:[%s3331_s3 + $0xb4] ss:$8 sps:$4 sm:$0xff]  }
  0x26   :  { %859 = vmatpush1.bf16.msra.mxu1 %v2064_v38  ;;  %v95_v38 = vld [vmem:[%s3329_s1 + $0x248] sm:$0xff]  ;;  %1819 = vmatpush1.bf16.msra.mxu0 %v2277_v44  ;;  %v2310_v44 = vld [vmem:[%s3331_s3 + $0xb0] ss:$8 sps:$4 sm:$0xff]  }
  0x27   :  { %860 = vmatprep.subr.bf16.mxu1 %v2073_v39  ;;  %v99_v39 = vld [vmem:[%s3329_s1 + $0x268] sm:$0xff] }
  0x28   :  { %v2075_v45 = vcombine.high %v95_v38, %v99_v39  ;;  %v127_v60 = vld [vmem:[%s3329_s1 + $0x348] sm:$0xff] }
  0x29   :  { %v131_v61 = vld [vmem:[%s3329_s1 + $0x368] sm:$0xff] }
  0x2a   :  { %861 = vmatpush1.bf16.msra.mxu1 %v2072_v42  ;;  %v103_v42 = vld [vmem:[%s3329_s1 + $0x288] sm:$0xff]  ;;  %v2107_v5 = vcombine.high %v127_v60, %v131_v61 }
  0x2b   :  { %862 = vmatprep.subr.bf16.mxu1 %v2081_v43  ;;  %v107_v43 = vld [vmem:[%s3329_s1 + $0x2a8] sm:$0xff] }
  0x2c   :  { %v2082_v53 = vcombine.low %v103_v42, %v107_v43  ;;  %v2287_v0 = vld [vmem:[%s3331_s3 + $0x44] ss:$8 sps:$4 sm:$0xff]   ;;  %v2289_v4 = vld [vmem:[%s3331_s3 + $0x40] ss:$8 sps:$4 sm:$0xff]  }
  0x2d   :  { %v2293_v13 = vld [vmem:[%s3331_s3 + $0x64] ss:$8 sps:$4 sm:$0xff]   ;;  %v2295_v18 = vld [vmem:[%s3331_s3 + $0x60] ss:$8 sps:$4 sm:$0xff]  }
  0x2e   :  { %863 = vmatpush1.bf16.msra.mxu1 %v2080_v46  ;;  %v2278_v46 = vld [vmem:[%s3331_s3 + $0x14] ss:$8 sps:$4 sm:$0xff]   ;;  %v2299_v26 = vld [vmem:[%s3331_s3 + $0x84] ss:$8 sps:$4 sm:$0xff]   ;;  %v2301_v30 = vld [vmem:[%s3331_s3 + $0x80] ss:$8 sps:$4 sm:$0xff]  }
  0x2f   :  { %864 = vmatprep.subr.bf16.mxu1 %v2089_v47  ;;  %v2074_v47 = vcombine.low %v95_v38, %v99_v39  ;;  %1820 = vmatprep.subr.bf16.mxu0 %v2278_v46  ;;  %v2305_v34 = vld [vmem:[%s3331_s3 + $0xa4] ss:$8 sps:$4 sm:$0xff]   ;;  %v52_v38 = vld [vmem:[%s3329_s1 + $0xf0] sm:$0xff]  ;;  %v2307_v39 = vld [vmem:[%s3331_s3 + $0xa0] ss:$8 sps:$4 sm:$0xff]  }
  0x30   :  { %v2311_v46 = vld [vmem:[%s3331_s3 + $0xc4] ss:$8 sps:$4 sm:$0xff]  }
  0x32   :  { %865 = vmatpush1.bf16.msra.mxu1 %v2088_v50  ;;  %v2280_v50 = vld [vmem:[%s3331_s3 + $0x10] ss:$8 sps:$4 sm:$0xff]  }
  0x33   :  { %866 = vmatprep.subr.bf16.mxu1 %v2097_v51  ;;  %v2083_v51 = vcombine.high %v103_v42, %v107_v43  ;;  %1821 = vmatpush1.bf16.msra.mxu0 %v2280_v50  ;;  %v56_v42 = vld [vmem:[%s3329_s1 + $0x110] sm:$0xff]  ;;  %v2313_v50 = vld [vmem:[%s3331_s3 + $0xc0] ss:$8 sps:$4 sm:$0xff]  }
  0x34   :  { %1822 = vmatprep.subr.bf16.mxu0 %v2281_v52  ;;  %v60_v43 = vld [vmem:[%s3329_s1 + $0x130] sm:$0xff] }
  0x35   :  { %v2314_v52 = vld [vmem:[%s3331_s3 + $0xd4] ss:$8 sps:$4 sm:$0xff]  }
  0x36   :  { %867 = vmatpush1.bf16.msra.mxu1 %v2096_v54  ;;  %v119_v54 = vld [vmem:[%s3329_s1 + $0x308] sm:$0xff] }
  0x37   :  { %868 = vmatprep.subr.bf16.mxu1 %v2105_v55  ;;  %v123_v55 = vld [vmem:[%s3329_s1 + $0x328] sm:$0xff]  ;;  %1823 = vmatpush1.bf16.msra.mxu0 %v2283_v56 }
  0x38   :  { %v2098_v1 = vcombine.low %v119_v54, %v123_v55 }
  0x3a   :  { %869 = vmatpush1.bf16.msra.mxu1 %v2104_v58  ;;  %v2284_v58 = vld [vmem:[%s3331_s3 + $0x34] ss:$8 sps:$4 sm:$0xff]  }
  0x3b   :  { %870 = vmatprep.subr.bf16.mxu1 %v2113_v59  ;;  %v2090_v59 = vcombine.low %v111_v48, %v115_v49  ;;  %1824 = vmatprep.subr.bf16.mxu0 %v2284_v58  ;;  %v64_v48 = vld [vmem:[%s3329_s1 + $0x150] sm:$0xff] }
  0x3c   :  { %v68_v49 = vld [vmem:[%s3329_s1 + $0x170] sm:$0xff] }
  0x3d   :  { %v2045_v56 = vcombine.high %v64_v48, %v68_v49  ;;  %v80_v58 = vld [vmem:[%s3329_s1 + $0x1d0] sm:$0xff] }
  0x3e   :  { %871 = vmatpush1.bf16.msra.mxu1 %v2112_v62  ;;  %v2286_v62 = vld [vmem:[%s3331_s3 + $0x30] ss:$8 sps:$4 sm:$0xff]  }
  0x3f   :  { %872 = vmatprep.subr.bf16.mxu1 %v2121_v63  ;;  %v2099_v63 = vcombine.high %v119_v54, %v123_v55  ;;  %1825 = vmatpush1.bf16.msra.mxu0 %v2286_v62  ;;  %v72_v54 = vld [vmem:[%s3329_s1 + $0x190] sm:$0xff]  ;;  %v2317_v62 = vld [vmem:[%s3331_s3 + $0xe4] ss:$8 sps:$4 sm:$0xff]  }
  0x40   :  { %1826 = vmatprep.subr.bf16.mxu0 %v2287_v0  ;;  %v76_v55 = vld [vmem:[%s3329_s1 + $0x1b0] sm:$0xff]  ;;  %v2319_v0 = vld [vmem:[%s3331_s3 + $0xe0] ss:$8 sps:$4 sm:$0xff]  }
  0x42   :  { %873 = vmatpush1.bf16.msra.mxu1 %v2120_v2  ;;  %v135_v2 = vld [vmem:[%s3329_s1 + $0x388] sm:$0xff] }
  0x43   :  { %885 = vmatprep.subr.bf16.mxu1 %v2003_v3  ;;  %v139_v3 = vld [vmem:[%s3329_s1 + $0x3a8] sm:$0xff]  ;;  %1827 = vmatpush1.bf16.msra.mxu0 %v2289_v4  ;;  %v2320_v4 = vld [vmem:[%s3331_s3 + $0xf4] ss:$8 sps:$4 sm:$0xff]  }
  0x44   :  { %v2114_v14 = vcombine.low %v135_v2, %v139_v3 }
  0x45   :  { %875 = vmatmul.mubr.bf16.vlgmr.msra.gmra.mrb[0].mxu1 %v2614_v6 }
  0x46   :  { %886 = vmatpush1.bf16.msra.mxu1 %v2002_v7  ;;  %917 = vmatprep.mubr.bf16.mxu1 %v2530_v17  ;;  %v2290_v7 = vld [vmem:[%s3331_s3 + $0x54] ss:$8 sps:$4 sm:$0xff]  }
  0x47   :  { %887 = vmatprep.subr.bf16.mxu1 %v2011_v8  ;;  %v2106_v8 = vcombine.low %v127_v60, %v131_v61  ;;  %1828 = vmatprep.subr.bf16.mxu0 %v2290_v7  ;;  %v2316_v60 = vld [vmem:[%s3331_s3 + $0xd0] ss:$8 sps:$4 sm:$0xff]   ;;  %v2053_v61 = vcombine.high %v72_v54, %v76_v55 }
  0x48   :  { %v2322_v7 = vld [vmem:[%s3331_s3 + $0xf0] ss:$8 sps:$4 sm:$0xff]  }
  0x4a   :  { %888 = vmatpush1.bf16.msra.mxu1 %v2010_v11  ;;  %v2292_v11 = vld [vmem:[%s3331_s3 + $0x50] ss:$8 sps:$4 sm:$0xff]  }
  0x4b   :  { %889 = vmatprep.subr.bf16.mxu1 %v2019_v12  ;;  %v2115_v12 = vcombine.high %v135_v2, %v139_v3  ;;  %1829 = vmatpush1.bf16.msra.mxu0 %v2292_v11  ;;  %v88_v2 = vld [vmem:[%s3329_s1 + $0x210] sm:$0xff]  ;;  %v2325_v11 = vld [vmem:[%s3331_s3 + $0x104] ss:$8 sps:$4 sm:$0xff]  }
  0x4c   :  { %1830 = vmatprep.subr.bf16.mxu0 %v2293_v13  ;;  %v92_v3 = vld [vmem:[%s3329_s1 + $0x230] sm:$0xff] }
  0x4e   :  { %890 = vmatpush1.bf16.msra.mxu1 %v2018_v15  ;;  %v24_v15 = vld [vmem:[%s3329_s1 + $0x10] sm:$0xff] }
  0x4f   :  { %891 = vmatprep.subr.bf16.mxu1 %v2027_v16  ;;  %v28_v16 = vld [vmem:[%s3329_s1 + $0x30] sm:$0xff]  ;;  %1831 = vmatpush1.bf16.msra.mxu0 %v2295_v18 }
  0x50   :  { %v2004_v27 = vcombine.low %v24_v15, %v28_v16 }
  0x52   :  { %892 = vmatpush1.bf16.msra.mxu1 %v2026_v20  ;;  %v2296_v20 = vld [vmem:[%s3331_s3 + $0x74] ss:$8 sps:$4 sm:$0xff]  }
  0x53   :  { %893 = vmatprep.subr.bf16.mxu1 %v2035_v21  ;;  %v2122_v21 = vcombine.low %v143_v9, %v147_v10  ;;  %1832 = vmatprep.subr.bf16.mxu0 %v2296_v20  ;;  %v96_v9 = vld [vmem:[%s3329_s1 + $0x250] sm:$0xff] }
  0x54   :  { %v100_v10 = vld [vmem:[%s3329_s1 + $0x270] sm:$0xff] }
  0x55   :  { %v2077_v13 = vcombine.high %v96_v9, %v100_v10  ;;  %v116_v20 = vld [vmem:[%s3329_s1 + $0x2f0] sm:$0xff] }
  0x56   :  { %894 = vmatpush1.bf16.msra.mxu1 %v2034_v24  ;;  %v2298_v24 = vld [vmem:[%s3331_s3 + $0x70] ss:$8 sps:$4 sm:$0xff]  }
  0x57   :  { %895 = vmatprep.subr.bf16.mxu1 %v2043_v25  ;;  %v2005_v25 = vcombine.high %v24_v15, %v28_v16  ;;  %1833 = vmatpush1.bf16.msra.mxu0 %v2298_v24  ;;  %v108_v15 = vld [vmem:[%s3329_s1 + $0x2b0] sm:$0xff]  ;;  %v2076_v16 = vcombine.low %v96_v9, %v100_v10 }
  0x58   :  { %1834 = vmatprep.subr.bf16.mxu0 %v2299_v26  ;;  %v124_v24 = vld [vmem:[%s3329_s1 + $0x330] sm:$0xff] }
  0x59   :  { %v2101_v26 = vcombine.high %v120_v23, %v124_v24 }
  0x5a   :  { %896 = vmatpush1.bf16.msra.mxu1 %v2042_v28  ;;  %v40_v28 = vld [vmem:[%s3329_s1 + $0x90] sm:$0xff] }
  0x5b   :  { %897 = vmatprep.subr.bf16.mxu1 %v2051_v29  ;;  %v44_v29 = vld [vmem:[%s3329_s1 + $0xb0] sm:$0xff]  ;;  %1835 = vmatpush1.bf16.msra.mxu0 %v2301_v30 }
  0x5e   :  { %898 = vmatpush1.bf16.msra.mxu1 %v2050_v32  ;;  %v2302_v32 = vld [vmem:[%s3331_s3 + $0x94] ss:$8 sps:$4 sm:$0xff]  }
  0x5f   :  { %899 = vmatprep.subr.bf16.mxu1 %v2059_v33  ;;  %v2304_v33 = vld [vmem:[%s3331_s3 + $0x90] ss:$8 sps:$4 sm:$0xff]   ;;  %1836 = vmatprep.subr.bf16.mxu0 %v2302_v32 }
  0x60   :  { %1837 = vmatpush1.bf16.msra.mxu0 %v2304_v33  ;;  %v140_v32 = vld [vmem:[%s3329_s1 + $0x3b0] sm:$0xff] }
  0x61   :  { %1838 = vmatprep.subr.bf16.mxu0 %v2305_v34 }
  0x62   :  { %900 = vmatpush1.bf16.msra.mxu1 %v2058_v36  ;;  %v2021_v36 = vcombine.high %v40_v28, %v44_v29 }
  0x63   :  { %901 = vmatprep.subr.bf16.mxu1 %v2067_v37  ;;  %v48_v37 = vld [vmem:[%s3329_s1 + $0xd0] sm:$0xff] }
  0x64   :  { %1839 = vmatpush1.bf16.msra.mxu0 %v2307_v39  ;;  %v25_v39 = vld [vmem:[%s3329_s1 + $0x18] sm:$0xff] }
  0x65   :  { %1840 = vmatprep.subr.bf16.mxu0 %v2308_v40  ;;  %v29_v40 = vld [vmem:[%s3329_s1 + $0x38] sm:$0xff] }
  0x66   :  { %902 = vmatpush1.bf16.msra.mxu1 %v2066_v41  ;;  %v2020_v41 = vcombine.low %v40_v28, %v44_v29  ;;  %v132_v28 = vld [vmem:[%s3329_s1 + $0x370] sm:$0xff]  ;;  %v2100_v29 = vcombine.low %v120_v23, %v124_v24  ;;  %v121_v24 = vld [vmem:[%s3329_s1 + $0x318] sm:$0xff] }
  0x67   :  { %903 = vmatprep.subr.bf16.mxu1 %v2075_v45  ;;  %v2029_v45 = vcombine.high %v48_v37, %v52_v38 }
  0x68   :  { %1841 = vmatpush1.bf16.msra.mxu0 %v2310_v44  ;;  %v37_v44 = vld [vmem:[%s3329_s1 + $0x78] sm:$0xff] }
  0x69   :  { %1842 = vmatprep.subr.bf16.mxu0 %v2311_v46 }
  0x6a   :  { %904 = vmatpush1.bf16.msra.mxu1 %v2074_v47  ;;  %v2028_v47 = vcombine.low %v48_v37, %v52_v38 }
  0x6b   :  { %905 = vmatprep.subr.bf16.mxu1 %v2083_v51  ;;  %v2037_v51 = vcombine.high %v56_v42, %v60_v43 }
  0x6c   :  { %1843 = vmatpush1.bf16.msra.mxu0 %v2313_v50 }
  0x6d   :  { %1844 = vmatprep.subr.bf16.mxu0 %v2314_v52  ;;  %v53_v52 = vld [vmem:[%s3329_s1 + $0xf8] sm:$0xff] }
  0x6e   :  { %906 = vmatpush1.bf16.msra.mxu1 %v2082_v53  ;;  %v2036_v53 = vcombine.low %v56_v42, %v60_v43  ;;  %v2007_v42 = vcombine.high %v25_v39, %v29_v40  ;;  %v33_v43 = vld [vmem:[%s3329_s1 + $0x58] sm:$0xff] }
  0x6f   :  { %907 = vmatprep.subr.bf16.mxu1 %v2091_v57  ;;  %v2044_v57 = vcombine.low %v64_v48, %v68_v49  ;;  %v2015_v46 = vcombine.high %v33_v43, %v37_v44  ;;  %v45_v48 = vld [vmem:[%s3329_s1 + $0xb8] sm:$0xff]  ;;  %v2014_v49 = vcombine.low %v33_v43, %v37_v44  ;;  %v3004_v44 = vld [vmem:[%s3332_s2] sm:$0xff] }
  0x70   :  { %1845 = vmatpush1.bf16.msra.mxu0 %v2316_v60 }
  0x71   :  { %1846 = vmatprep.subr.bf16.mxu0 %v2317_v62  ;;  %v73_v62 = vld [vmem:[%s3329_s1 + $0x198] sm:$0xff] }
  0x72   :  { %908 = vmatpush1.bf16.msra.mxu1 %v2090_v59  ;;  %v84_v59 = vld [vmem:[%s3329_s1 + $0x1f0] sm:$0xff] }
  0x73   :  { %909 = vmatprep.subr.bf16.mxu1 %v2099_v63  ;;  %v2052_v63 = vcombine.low %v72_v54, %v76_v55  ;;  %v57_v55 = vld [vmem:[%s3329_s1 + $0x118] sm:$0xff] }
  0x74   :  { %1847 = vmatpush1.bf16.msra.mxu0 %v2319_v0 }
  0x75   :  { %1848 = vmatprep.subr.bf16.mxu0 %v2320_v4 }
  0x76   :  { %910 = vmatpush1.bf16.msra.mxu1 %v2098_v1  ;;  %v2061_v1 = vcombine.high %v80_v58, %v84_v59 }
  0x77   :  { %911 = vmatprep.subr.bf16.mxu1 %v2107_v5  ;;  %v2060_v5 = vcombine.low %v80_v58, %v84_v59  ;;  %v65_v58 = vld [vmem:[%s3329_s1 + $0x158] sm:$0xff] }
  0x78   :  { %1849 = vmatpush1.bf16.msra.mxu0 %v2322_v7  ;;  %v69_v59 = vld [vmem:[%s3329_s1 + $0x178] sm:$0xff] }
  0x79   :  { %1861 = vmatprep.subr.bf16.mxu0 %v2325_v11  ;;  %v2046_v0 = vcombine.low %v65_v58, %v69_v59  ;;  %v89_v7 = vld [vmem:[%s3329_s1 + $0x218] sm:$0xff] }
  0x7a   :  { %912 = vmatpush1.bf16.msra.mxu1 %v2106_v8  ;;  %v2069_v8 = vcombine.high %v88_v2, %v92_v3  ;;  %v97_v11 = vld [vmem:[%s3329_s1 + $0x258] sm:$0xff] }
  0x7b   :  { %913 = vmatprep.subr.bf16.mxu1 %v2115_v12  ;;  %v2068_v12 = vcombine.low %v88_v2, %v92_v3  ;;  %v81_v2 = vld [vmem:[%s3329_s1 + $0x1d8] sm:$0xff] }
  0x7c   :  { %v85_v3 = vld [vmem:[%s3329_s1 + $0x1f8] sm:$0xff] }
  0x7d   :  { %v2062_v9 = vcombine.low %v81_v2, %v85_v3 }
  0x7e   :  { %914 = vmatpush1.bf16.msra.mxu1 %v2114_v14  ;;  %v104_v14 = vld [vmem:[%s3329_s1 + $0x290] sm:$0xff] }
  0x7f   :  { %915 = vmatprep.subr.bf16.mxu1 %v2123_v19  ;;  %v2085_v18 = vcombine.high %v104_v14, %v108_v15  ;;  %v112_v19 = vld [vmem:[%s3329_s1 + $0x2d0] sm:$0xff] }
  0x80   :  { %v2093_v22 = vcombine.high %v112_v19, %v116_v20 }
  0x82   :  { %916 = vmatpush1.bf16.msra.mxu1 %v2122_v21  ;;  %v2084_v21 = vcombine.low %v104_v14, %v108_v15  ;;  %v105_v15 = vld [vmem:[%s3329_s1 + $0x298] sm:$0xff] }
  0x83   :  { %928 = vmatprep.subr.bf16.mxu1 %v2005_v25  ;;  %v2092_v25 = vcombine.low %v112_v19, %v116_v20  ;;  %v113_v20 = vld [vmem:[%s3329_s1 + $0x2d8] sm:$0xff] }
  0x85   :  { %918 = vmatmul.mubr.bf16.vlgmr.msra.gmra.mrb[4].mxu1 %v2614_v6 }
  0x86   :  { %929 = vmatpush1.bf16.msra.mxu1 %v2004_v27  ;;  %960 = vmatprep.mubr.bf16.mxu1 %v2530_v17  ;;  %v128_v27 = vld [vmem:[%s3329_s1 + $0x350] sm:$0xff] }
  0x87   :  { %930 = vmatprep.subr.bf16.mxu1 %v2013_v31  ;;  %v2109_v30 = vcombine.high %v128_v27, %v132_v28  ;;  %v136_v31 = vld [vmem:[%s3329_s1 + $0x390] sm:$0xff]  ;;  %v2108_v33 = vcombine.low %v128_v27, %v132_v28  ;;  %v129_v28 = vld [vmem:[%s3329_s1 + $0x358] sm:$0xff] }
  0x88   :  { %v2117_v34 = vcombine.high %v136_v31, %v140_v32  ;;  %v2116_v37 = vcombine.low %v136_v31, %v140_v32  ;;  %v137_v32 = vld [vmem:[%s3329_s1 + $0x398] sm:$0xff] }
  0x8a   :  { %931 = vmatpush1.bf16.msra.mxu1 %v2012_v35  ;;  %v144_v35 = vld [vmem:[%s3329_s1 + $0x3d0] sm:$0xff] }
  0x8b   :  { %932 = vmatprep.subr.bf16.mxu1 %v2021_v36  ;;  %v148_v36 = vld [vmem:[%s3329_s1 + $0x3f0] sm:$0xff] }
  0x8c   :  { %v2125_v38 = vcombine.high %v144_v35, %v148_v36 }
  0x8e   :  { %933 = vmatpush1.bf16.msra.mxu1 %v2020_v41  ;;  %v2124_v41 = vcombine.low %v144_v35, %v148_v36  ;;  %v145_v36 = vld [vmem:[%s3329_s1 + $0x3d8] sm:$0xff] }
  0x8f   :  { %934 = vmatprep.subr.bf16.mxu1 %v2029_v45  ;;  %v2006_v45 = vcombine.low %v25_v39, %v29_v40 }
  0x92   :  { %935 = vmatpush1.bf16.msra.mxu1 %v2028_v47  ;;  %v41_v47 = vld [vmem:[%s3329_s1 + $0x98] sm:$0xff] }
  0x93   :  { %936 = vmatprep.subr.bf16.mxu1 %v2037_v51  ;;  %v2023_v50 = vcombine.high %v41_v47, %v45_v48  ;;  %v49_v51 = vld [vmem:[%s3329_s1 + $0xd8] sm:$0xff] }
  0x94   :  { %v2031_v54 = vcombine.high %v49_v51, %v53_v52 }
  0x96   :  { %937 = vmatpush1.bf16.msra.mxu1 %v2036_v53  ;;  %v2022_v53 = vcombine.low %v41_v47, %v45_v48 }
  0x97   :  { %938 = vmatprep.subr.bf16.mxu1 %v2045_v56  ;;  %v2030_v56 = vcombine.low %v49_v51, %v53_v52 }
  0x9a   :  { %939 = vmatpush1.bf16.msra.mxu1 %v2044_v57 }
  0x9b   :  { %940 = vmatprep.subr.bf16.mxu1 %v2053_v61  ;;  %v2047_v61 = vcombine.high %v65_v58, %v69_v59 }
  0x9e   :  { %941 = vmatpush1.bf16.msra.mxu1 %v2052_v63  ;;  %v77_v63 = vld [vmem:[%s3329_s1 + $0x1b8] sm:$0xff] }
  0x9f   :  { %942 = vmatprep.subr.bf16.mxu1 %v2061_v1  ;;  %v2055_v1 = vcombine.high %v73_v62, %v77_v63  ;;  %v2054_v4 = vcombine.low %v73_v62, %v77_v63  ;;  %v2326_v62 = vld [vmem:[%s3331_s3 + $0x110] ss:$8 sps:$4 sm:$0xff]   ;;  %v2331_v63 = vld [vmem:[%s3331_s3 + $0x124] ss:$8 sps:$4 sm:$0xff]  }
  0xa2   :  { %943 = vmatpush1.bf16.msra.mxu1 %v2060_v5  ;;  %v2063_v5 = vcombine.high %v81_v2, %v85_v3  ;;  %v2332_v2 = vld [vmem:[%s3331_s3 + $0x130] ss:$8 sps:$4 sm:$0xff]   ;;  %v2337_v3 = vld [vmem:[%s3331_s3 + $0x144] ss:$8 sps:$4 sm:$0xff]  }
  0xa3   :  { %944 = vmatprep.subr.bf16.mxu1 %v2069_v8  ;;  %v93_v8 = vld [vmem:[%s3329_s1 + $0x238] sm:$0xff] }
  0xa4   :  { %v2071_v10 = vcombine.high %v89_v7, %v93_v8 }
  0xa6   :  { %945 = vmatpush1.bf16.msra.mxu1 %v2068_v12  ;;  %v101_v12 = vld [vmem:[%s3329_s1 + $0x278] sm:$0xff] }
  0xa7   :  { %946 = vmatprep.subr.bf16.mxu1 %v2077_v13  ;;  %v2070_v13 = vcombine.low %v89_v7, %v93_v8  ;;  %v2079_v14 = vcombine.high %v97_v11, %v101_v12  ;;  %v2338_v7 = vld [vmem:[%s3331_s3 + $0x150] ss:$8 sps:$4 sm:$0xff]   ;;  %v2343_v8 = vld [vmem:[%s3331_s3 + $0x164] ss:$8 sps:$4 sm:$0xff]  }
  0xaa   :  { %947 = vmatpush1.bf16.msra.mxu1 %v2076_v16  ;;  %v109_v16 = vld [vmem:[%s3329_s1 + $0x2b8] sm:$0xff] }
  0xab   :  { %948 = vmatprep.subr.bf16.mxu1 %v2085_v18  ;;  %v2078_v18 = vcombine.low %v97_v11, %v101_v12  ;;  %v2087_v19 = vcombine.high %v105_v15, %v109_v16  ;;  %v2344_v11 = vld [vmem:[%s3331_s3 + $0x170] ss:$8 sps:$4 sm:$0xff]   ;;  %v2349_v12 = vld [vmem:[%s3331_s3 + $0x184] ss:$8 sps:$4 sm:$0xff]  }
  0xae   :  { %949 = vmatpush1.bf16.msra.mxu1 %v2084_v21  ;;  %v117_v21 = vld [vmem:[%s3329_s1 + $0x2f8] sm:$0xff] }
  0xaf   :  { %950 = vmatprep.subr.bf16.mxu1 %v2093_v22  ;;  %v2086_v22 = vcombine.low %v105_v15, %v109_v16  ;;  %v2095_v23 = vcombine.high %v113_v20, %v117_v21  ;;  %v2350_v15 = vld [vmem:[%s3331_s3 + $0x190] ss:$8 sps:$4 sm:$0xff]   ;;  %v2355_v16 = vld [vmem:[%s3331_s3 + $0x1a4] ss:$8 sps:$4 sm:$0xff]  }
  0xb2   :  { %951 = vmatpush1.bf16.msra.mxu1 %v2092_v25  ;;  %v125_v25 = vld [vmem:[%s3329_s1 + $0x338] sm:$0xff] }
  0xb3   :  { %952 = vmatprep.subr.bf16.mxu1 %v2101_v26  ;;  %v2094_v26 = vcombine.low %v113_v20, %v117_v21  ;;  %v2103_v27 = vcombine.high %v121_v24, %v125_v25  ;;  %v2356_v20 = vld [vmem:[%s3331_s3 + $0x1b0] ss:$8 sps:$4 sm:$0xff]   ;;  %v2361_v21 = vld [vmem:[%s3331_s3 + $0x1c4] ss:$8 sps:$4 sm:$0xff]  }
  0xb6   :  { %953 = vmatpush1.bf16.msra.mxu1 %v2100_v29  ;;  %v133_v29 = vld [vmem:[%s3329_s1 + $0x378] sm:$0xff] }
  0xb7   :  { %954 = vmatprep.subr.bf16.mxu1 %v2109_v30  ;;  %v2102_v30 = vcombine.low %v121_v24, %v125_v25  ;;  %v2111_v31 = vcombine.high %v129_v28, %v133_v29 }
  0xba   :  { %955 = vmatpush1.bf16.msra.mxu1 %v2108_v33  ;;  %v141_v33 = vld [vmem:[%s3329_s1 + $0x3b8] sm:$0xff] }
  0xbb   :  { %956 = vmatprep.subr.bf16.mxu1 %v2117_v34  ;;  %v2110_v34 = vcombine.low %v129_v28, %v133_v29  ;;  %v2119_v35 = vcombine.high %v137_v32, %v141_v33  ;;  %v2367_v28 = vld [vmem:[%s3331_s3 + $0x1e4] ss:$8 sps:$4 sm:$0xff]  }
  0xbe   :  { %957 = vmatpush1.bf16.msra.mxu1 %v2116_v37  ;;  %v149_v37 = vld [vmem:[%s3329_s1 + $0x3f8] sm:$0xff] }
  0xbf   :  { %958 = vmatprep.subr.bf16.mxu1 %v2125_v38  ;;  %v2118_v38 = vcombine.low %v137_v32, %v141_v33  ;;  %v2127_v39 = vcombine.high %v145_v36, %v149_v37  ;;  %v2126_v40 = vcombine.low %v145_v36, %v149_v37 }
  0xc2   :  { %959 = vmatpush1.bf16.msra.mxu1 %v2124_v41  ;;  %v152_v41 = vlaneseq }
  0xc3   :  { %971 = vmatprep.subr.bf16.mxu1 %v2007_v42 }
  0xc4   :  { %v2998_v42 = vshrl.u32 %v152_v41, 7  ;;  %v2368_v41 = vld [vmem:[%s3331_s3 + $0x1f0] ss:$8 sps:$4 sm:$0xff]  }
  0xc5   :  { %961 = vmatmul.mubr.bf16.vlgmr.msra.gmra.mrb[8].mxu1 %v2614_v6 }
  0xc6   :  { %972 = vmatpush1.bf16.msra.mxu1 %v2006_v45  ;;  %1003 = vmatprep.mubr.bf16.mxu1 %v2530_v17  ;;  %v61_v17 = vld [vmem:[%s3329_s1 + $0x138] sm:$0xff]  ;;  %v154_v43 = vsub.s32 0, %v2998_v42  ;;  %v158_v45 = vsub.s32 1, %v2998_v42  ;;  %v162_v24 = vsub.s32 2, %v2998_v42  ;;  %v166_v25 = vsub.s32 3, %v2998_v42 }
  0xc7   :  { %973 = vmatprep.subr.bf16.mxu1 %v2015_v46  ;;  %v2039_v57 = vcombine.high %v57_v55, %v61_v17  ;;  %v2038_v60 = vcombine.low %v57_v55, %v61_v17 }
  0xc8   :  { %v155_v46 = vrot.slane %v3004_v44, %v154_v43  ;;  %v167_v29 = vrot.slane %v3004_v44, %v166_v25 }
  0xca   :  { %974 = vmatpush1.bf16.msra.mxu1 %v2014_v49 }
  0xcb   :  { %975 = vmatprep.subr.bf16.mxu1 %v2023_v50 }
  0xce   :  { %976 = vmatpush1.bf16.msra.mxu1 %v2022_v53 }
  0xcf   :  { %977 = vmatprep.subr.bf16.mxu1 %v2031_v54 }
  0xd2   :  { %978 = vmatpush1.bf16.msra.mxu1 %v2030_v56 }
  0xd3   :  { %979 = vmatprep.subr.bf16.mxu1 %v2039_v57 }
  0xd6   :  { %980 = vmatpush1.bf16.msra.mxu1 %v2038_v60  ;;  %v2323_v60 = vld [vmem:[%s3331_s3 + $0x100] ss:$8 sps:$4 sm:$0xff]  }
  0xd7   :  { %981 = vmatprep.subr.bf16.mxu1 %v2047_v61  ;;  %v2328_v61 = vld [vmem:[%s3331_s3 + $0x114] ss:$8 sps:$4 sm:$0xff]  }
  0xda   :  { %982 = vmatpush1.bf16.msra.mxu1 %v2046_v0  ;;  %v2329_v0 = vld [vmem:[%s3331_s3 + $0x120] ss:$8 sps:$4 sm:$0xff]  }
  0xdb   :  { %983 = vmatprep.subr.bf16.mxu1 %v2055_v1  ;;  %v2334_v1 = vld [vmem:[%s3331_s3 + $0x134] ss:$8 sps:$4 sm:$0xff]  }
  0xde   :  { %984 = vmatpush1.bf16.msra.mxu1 %v2054_v4  ;;  %v2335_v4 = vld [vmem:[%s3331_s3 + $0x140] ss:$8 sps:$4 sm:$0xff]  }
  0xdf   :  { %985 = vmatprep.subr.bf16.mxu1 %v2063_v5  ;;  %v2340_v5 = vld [vmem:[%s3331_s3 + $0x154] ss:$8 sps:$4 sm:$0xff]  }
  0xe2   :  { %986 = vmatpush1.bf16.msra.mxu1 %v2062_v9  ;;  %v2341_v9 = vld [vmem:[%s3331_s3 + $0x160] ss:$8 sps:$4 sm:$0xff]  }
  0xe3   :  { %987 = vmatprep.subr.bf16.mxu1 %v2071_v10  ;;  %v2346_v10 = vld [vmem:[%s3331_s3 + $0x174] ss:$8 sps:$4 sm:$0xff]  }
  0xe6   :  { %988 = vmatpush1.bf16.msra.mxu1 %v2070_v13  ;;  %v2347_v13 = vld [vmem:[%s3331_s3 + $0x180] ss:$8 sps:$4 sm:$0xff]  }
  0xe7   :  { %989 = vmatprep.subr.bf16.mxu1 %v2079_v14  ;;  %v2352_v14 = vld [vmem:[%s3331_s3 + $0x194] ss:$8 sps:$4 sm:$0xff]  }
  0xea   :  { %990 = vmatpush1.bf16.msra.mxu1 %v2078_v18  ;;  %v2353_v18 = vld [vmem:[%s3331_s3 + $0x1a0] ss:$8 sps:$4 sm:$0xff]  }
  0xeb   :  { %991 = vmatprep.subr.bf16.mxu1 %v2087_v19  ;;  %v2358_v19 = vld [vmem:[%s3331_s3 + $0x1b4] ss:$8 sps:$4 sm:$0xff]  }
  0xee   :  { %992 = vmatpush1.bf16.msra.mxu1 %v2086_v22  ;;  %v2359_v22 = vld [vmem:[%s3331_s3 + $0x1c0] ss:$8 sps:$4 sm:$0xff]  }
  0xef   :  { %993 = vmatprep.subr.bf16.mxu1 %v2095_v23  ;;  %v2364_v23 = vld [vmem:[%s3331_s3 + $0x1d4] ss:$8 sps:$4 sm:$0xff]  }
  0xf2   :  { %994 = vmatpush1.bf16.msra.mxu1 %v2094_v26  ;;  %v2362_v26 = vld [vmem:[%s3331_s3 + $0x1d0] ss:$8 sps:$4 sm:$0xff]  }
  0xf3   :  { %995 = vmatprep.subr.bf16.mxu1 %v2103_v27  ;;  %v163_v27 = vrot.slane %v3004_v44, %v162_v24  ;;  %v2418_v24 = vld [vmem:[%s3331_s3 + $0x2f4] ss:$8 sps:$4 sm:$0xff]  }
  0xf6   :  { %996 = vmatpush1.bf16.msra.mxu1 %v2102_v30 }
  0xf7   :  { %997 = vmatprep.subr.bf16.mxu1 %v2111_v31  ;;  %v2365_v31 = vld [vmem:[%s3331_s3 + $0x1e0] ss:$8 sps:$4 sm:$0xff]  }
  0xfa   :  { %998 = vmatpush1.bf16.msra.mxu1 %v2110_v34  ;;  %v2370_v34 = vld [vmem:[%s3331_s3 + $0x1f4] ss:$8 sps:$4 sm:$0xff]  }
  0xfb   :  { %999 = vmatprep.subr.bf16.mxu1 %v2119_v35 }
  0xfe   :  { %1000 = vmatpush1.bf16.msra.mxu1 %v2118_v38 }
  0xff   :  { %1001 = vmatprep.subr.bf16.mxu1 %v2127_v39 }
 0x102   :  { %1002 = vmatpush1.bf16.msra.mxu1 %v2126_v40 }
 0x105   :  { %1004 = vmatmul.mubr.bf16.vlgmr.msra.gmra.mrb[12].mxu1 %v2614_v6  ;;  %v159_v6 = vrot.slane %v3004_v44, %v158_v45 }
 0x118   :  { %v876_v47 = vpop.f32.mrb[0].mxu1 }
 0x119   :  { %v877_v48 = vadd.f32 %v876_v47, %v155_v46  ;;  %v878_v49 = vpop.f32.mrb[1].mxu1 }
 0x11a   :  { %v879_v50 = vadd.f32 %v878_v49, %v159_v6  ;;  %v880_v51 = vpop.f32.mrb[2].mxu1 }
 0x11b   :  { %v1014_v52 = vmax.f32 %v877_v48, 0.0  ;;  %v881_v53 = vadd.f32 %v880_v51, %v155_v46  ;;  %v882_v54 = vpop.f32.mrb[3].mxu1  ;;  %v2371_v51 = vld [vmem:[%s3331_s3 + $0x200] ss:$8 sps:$4 sm:$0xff]  }
 0x11c   :  { %v883_v55 = vadd.f32 %v882_v54, %v159_v6  ;;  %v1015_v56 = vmax.f32 %v879_v50, 0.0  ;;  %v2373_v6 = vld [vmem:[%s3331_s3 + $0x204] ss:$8 sps:$4 sm:$0xff]  }
 0x11d   :  { %v1022_v17 = vmax.f32 %v881_v53, 0.0  ;;  %v2374_v53 = vld [vmem:[%s3331_s3 + $0x210] ss:$8 sps:$4 sm:$0xff]   ;;  %v2379_v54 = vld [vmem:[%s3331_s3 + $0x224] ss:$8 sps:$4 sm:$0xff]  }
 0x11e   :  { %v1023_v57 = vmax.f32 %v883_v55, 0.0  ;;  %v2377_v55 = vld [vmem:[%s3331_s3 + $0x220] ss:$8 sps:$4 sm:$0xff]  }
 0x11f   :  { %v1030_v58 = vpack.c.bf16 %v1022_v17, %v1014_v52  ;;  %v2376_v52 = vld [vmem:[%s3331_s3 + $0x214] ss:$8 sps:$4 sm:$0xff]  }
 0x120   :  { %v1031_v59 = vpack.c.bf16 %v1023_v57, %v1015_v56  ;;  %v2382_v17 = vld [vmem:[%s3331_s3 + $0x234] ss:$8 sps:$4 sm:$0xff]   ;;  %v2380_v56 = vld [vmem:[%s3331_s3 + $0x230] ss:$8 sps:$4 sm:$0xff]   ;;  %v2385_v57 = vld [vmem:[%s3331_s3 + $0x244] ss:$8 sps:$4 sm:$0xff]  }
 0x122   :  { %1850 = vmatprep.mubr.bf16.mxu0 %v1031_v59  ;;  %v2388_v59 = vld [vmem:[%s3331_s3 + $0x254] ss:$8 sps:$4 sm:$0xff]  }
 0x123   :  { %1851 = vmatmul.mubr.bf16.vlgmr.msra.gmra.mrb[0].mxu0 %v1030_v58  ;;  %v2383_v58 = vld [vmem:[%s3331_s3 + $0x240] ss:$8 sps:$4 sm:$0xff]  }
 0x124   :  { %1862 = vmatpush1.bf16.msra.mxu0 %v2323_v60  ;;  %v2386_v60 = vld [vmem:[%s3331_s3 + $0x250] ss:$8 sps:$4 sm:$0xff]  }
 0x125   :  { %1863 = vmatprep.subr.bf16.mxu0 %v2328_v61  ;;  %v2391_v61 = vld [vmem:[%s3331_s3 + $0x264] ss:$8 sps:$4 sm:$0xff]  }
 0x128   :  { %1864 = vmatpush1.bf16.msra.mxu0 %v2326_v62  ;;  %v2389_v62 = vld [vmem:[%s3331_s3 + $0x260] ss:$8 sps:$4 sm:$0xff]  }
 0x129   :  { %1865 = vmatprep.subr.bf16.mxu0 %v2331_v63  ;;  %v2394_v63 = vld [vmem:[%s3331_s3 + $0x274] ss:$8 sps:$4 sm:$0xff]  }
 0x12c   :  { %1866 = vmatpush1.bf16.msra.mxu0 %v2329_v0  ;;  %v2392_v0 = vld [vmem:[%s3331_s3 + $0x270] ss:$8 sps:$4 sm:$0xff]  }
 0x12d   :  { %1867 = vmatprep.subr.bf16.mxu0 %v2334_v1  ;;  %v2397_v1 = vld [vmem:[%s3331_s3 + $0x284] ss:$8 sps:$4 sm:$0xff]  }
 0x130   :  { %1868 = vmatpush1.bf16.msra.mxu0 %v2332_v2  ;;  %v2395_v2 = vld [vmem:[%s3331_s3 + $0x280] ss:$8 sps:$4 sm:$0xff]  }
 0x131   :  { %1869 = vmatprep.subr.bf16.mxu0 %v2337_v3  ;;  %v2400_v3 = vld [vmem:[%s3331_s3 + $0x294] ss:$8 sps:$4 sm:$0xff]  }
 0x134   :  { %1870 = vmatpush1.bf16.msra.mxu0 %v2335_v4  ;;  %v2398_v4 = vld [vmem:[%s3331_s3 + $0x290] ss:$8 sps:$4 sm:$0xff]  }
 0x135   :  { %1871 = vmatprep.subr.bf16.mxu0 %v2340_v5  ;;  %v2403_v5 = vld [vmem:[%s3331_s3 + $0x2a4] ss:$8 sps:$4 sm:$0xff]  }
 0x138   :  { %1872 = vmatpush1.bf16.msra.mxu0 %v2338_v7  ;;  %v2401_v7 = vld [vmem:[%s3331_s3 + $0x2a0] ss:$8 sps:$4 sm:$0xff]  }
 0x139   :  { %1873 = vmatprep.subr.bf16.mxu0 %v2343_v8  ;;  %v2406_v8 = vld [vmem:[%s3331_s3 + $0x2b4] ss:$8 sps:$4 sm:$0xff]  }
 0x13c   :  { %1874 = vmatpush1.bf16.msra.mxu0 %v2341_v9  ;;  %v2404_v9 = vld [vmem:[%s3331_s3 + $0x2b0] ss:$8 sps:$4 sm:$0xff]  }
 0x13d   :  { %1875 = vmatprep.subr.bf16.mxu0 %v2346_v10  ;;  %v2409_v10 = vld [vmem:[%s3331_s3 + $0x2c4] ss:$8 sps:$4 sm:$0xff]  }
 0x140   :  { %1876 = vmatpush1.bf16.msra.mxu0 %v2344_v11  ;;  %v2407_v11 = vld [vmem:[%s3331_s3 + $0x2c0] ss:$8 sps:$4 sm:$0xff]  }
 0x141   :  { %1877 = vmatprep.subr.bf16.mxu0 %v2349_v12  ;;  %v2412_v12 = vld [vmem:[%s3331_s3 + $0x2d4] ss:$8 sps:$4 sm:$0xff]  }
 0x144   :  { %1878 = vmatpush1.bf16.msra.mxu0 %v2347_v13  ;;  %v170_v13 = vsub.s32 4, %v2998_v42 }
 0x145   :  { %1879 = vmatprep.subr.bf16.mxu0 %v2352_v14  ;;  %v174_v14 = vsub.s32 5, %v2998_v42 }
 0x148   :  { %1880 = vmatpush1.bf16.msra.mxu0 %v2350_v15  ;;  %v2410_v15 = vld [vmem:[%s3331_s3 + $0x2d0] ss:$8 sps:$4 sm:$0xff]  }
 0x149   :  { %1881 = vmatprep.subr.bf16.mxu0 %v2355_v16  ;;  %v171_v16 = vrot.slane %v3004_v44, %v170_v13  ;;  %v2466_v13 = vld [vmem:[%s3331_s3 + $0x3f4] ss:$8 sps:$4 sm:$0xff]  }
 0x14c   :  { %1882 = vmatpush1.bf16.msra.mxu0 %v2353_v18  ;;  %v2415_v18 = vld [vmem:[%s3331_s3 + $0x2e4] ss:$8 sps:$4 sm:$0xff]  }
 0x14d   :  { %1883 = vmatprep.subr.bf16.mxu0 %v2358_v19  ;;  %v175_v19 = vrot.slane %v3004_v44, %v174_v14 }
 0x150   :  { %1884 = vmatpush1.bf16.msra.mxu0 %v2356_v20 }
 0x151   :  { %1885 = vmatprep.subr.bf16.mxu0 %v2361_v21  ;;  %v2413_v21 = vld [vmem:[%s3331_s3 + $0x2e0] ss:$8 sps:$4 sm:$0xff]  }
 0x154   :  { %1886 = vmatpush1.bf16.msra.mxu0 %v2359_v22 }
 0x155   :  { %1887 = vmatprep.subr.bf16.mxu0 %v2364_v23 }
 0x158   :  { %v919_v30 = vpop.f32.mrb[4].mxu1  ;;  %1888 = vmatpush1.bf16.msra.mxu0 %v2362_v26 }
 0x159   :  { %v920_v32 = vadd.f32 %v919_v30, %v163_v27  ;;  %v921_v33 = vpop.f32.mrb[5].mxu1  ;;  %1889 = vmatprep.subr.bf16.mxu0 %v2367_v28 }
 0x15a   :  { %v922_v35 = vadd.f32 %v921_v33, %v167_v29  ;;  %v923_v36 = vpop.f32.mrb[6].mxu1  ;;  %v2421_v33 = vld [vmem:[%s3331_s3 + $0x304] ss:$8 sps:$4 sm:$0xff]  }
 0x15b   :  { %v1016_v37 = vmax.f32 %v920_v32, 0.0  ;;  %v924_v38 = vadd.f32 %v923_v36, %v163_v27  ;;  %v925_v39 = vpop.f32.mrb[7].mxu1 }
 0x15c   :  { %v926_v40 = vadd.f32 %v925_v39, %v167_v29  ;;  %1890 = vmatpush1.bf16.msra.mxu0 %v2365_v31  ;;  %v1017_v47 = vmax.f32 %v922_v35, 0.0  ;;  %v2416_v31 = vld [vmem:[%s3331_s3 + $0x2f0] ss:$8 sps:$4 sm:$0xff]   ;;  %v2424_v39 = vld [vmem:[%s3331_s3 + $0x314] ss:$8 sps:$4 sm:$0xff]  }
 0x15d   :  { %v1024_v46 = vmax.f32 %v924_v38, 0.0  ;;  %1891 = vmatprep.subr.bf16.mxu0 %v2370_v34  ;;  %v2419_v38 = vld [vmem:[%s3331_s3 + $0x300] ss:$8 sps:$4 sm:$0xff]  }
 0x15e   :  { %v1025_v48 = vmax.f32 %v926_v40, 0.0  ;;  %v2422_v40 = vld [vmem:[%s3331_s3 + $0x310] ss:$8 sps:$4 sm:$0xff]  }
 0x15f   :  { %v1032_v49 = vpack.c.bf16 %v1024_v46, %v1016_v37  ;;  %v2425_v46 = vld [vmem:[%s3331_s3 + $0x320] ss:$8 sps:$4 sm:$0xff]  }
 0x160   :  { %v1033_v50 = vpack.c.bf16 %v1025_v48, %v1017_v47  ;;  %1892 = vmatpush1.bf16.msra.mxu0 %v2368_v41  ;;  %v2427_v41 = vld [vmem:[%s3331_s3 + $0x324] ss:$8 sps:$4 sm:$0xff]   ;;  %v2428_v47 = vld [vmem:[%s3331_s3 + $0x330] ss:$8 sps:$4 sm:$0xff]  }
 0x161   :  { %1904 = vmatprep.subr.bf16.mxu0 %v2373_v6  ;;  %v2430_v6 = vld [vmem:[%s3331_s3 + $0x334] ss:$8 sps:$4 sm:$0xff]   ;;  %v2433_v48 = vld [vmem:[%s3331_s3 + $0x344] ss:$8 sps:$4 sm:$0xff]  }
 0x162   :  { %1893 = vmatprep.mubr.bf16.mxu0 %v1033_v50  ;;  %v2436_v50 = vld [vmem:[%s3331_s3 + $0x354] ss:$8 sps:$4 sm:$0xff]  }
 0x163   :  { %1894 = vmatmul.mubr.bf16.vlgmr.msra.gmra.mrb[0].mxu0 %v1032_v49  ;;  %v2431_v49 = vld [vmem:[%s3331_s3 + $0x340] ss:$8 sps:$4 sm:$0xff]  }
 0x164   :  { %1905 = vmatpush1.bf16.msra.mxu0 %v2371_v51  ;;  %v2434_v51 = vld [vmem:[%s3331_s3 + $0x350] ss:$8 sps:$4 sm:$0xff]  }
 0x165   :  { %1906 = vmatprep.subr.bf16.mxu0 %v2376_v52  ;;  %v2439_v52 = vld [vmem:[%s3331_s3 + $0x364] ss:$8 sps:$4 sm:$0xff]  }
 0x168   :  { %1907 = vmatpush1.bf16.msra.mxu0 %v2374_v53  ;;  %v2437_v53 = vld [vmem:[%s3331_s3 + $0x360] ss:$8 sps:$4 sm:$0xff]  }
 0x169   :  { %1908 = vmatprep.subr.bf16.mxu0 %v2379_v54  ;;  %v2442_v54 = vld [vmem:[%s3331_s3 + $0x374] ss:$8 sps:$4 sm:$0xff]  }
 0x16c   :  { %1909 = vmatpush1.bf16.msra.mxu0 %v2377_v55  ;;  %v2440_v55 = vld [vmem:[%s3331_s3 + $0x370] ss:$8 sps:$4 sm:$0xff]  }
 0x16d   :  { %1910 = vmatprep.subr.bf16.mxu0 %v2382_v17  ;;  %v2445_v17 = vld [vmem:[%s3331_s3 + $0x384] ss:$8 sps:$4 sm:$0xff]  }
 0x170   :  { %1911 = vmatpush1.bf16.msra.mxu0 %v2380_v56  ;;  %v2443_v56 = vld [vmem:[%s3331_s3 + $0x380] ss:$8 sps:$4 sm:$0xff]  }
 0x171   :  { %1912 = vmatprep.subr.bf16.mxu0 %v2385_v57  ;;  %v2448_v57 = vld [vmem:[%s3331_s3 + $0x394] ss:$8 sps:$4 sm:$0xff]  }
 0x174   :  { %1913 = vmatpush1.bf16.msra.mxu0 %v2383_v58  ;;  %v2446_v58 = vld [vmem:[%s3331_s3 + $0x390] ss:$8 sps:$4 sm:$0xff]  }
 0x175   :  { %1914 = vmatprep.subr.bf16.mxu0 %v2388_v59  ;;  %v2451_v59 = vld [vmem:[%s3331_s3 + $0x3a4] ss:$8 sps:$4 sm:$0xff]  }
 0x178   :  { %1915 = vmatpush1.bf16.msra.mxu0 %v2386_v60  ;;  %v2449_v60 = vld [vmem:[%s3331_s3 + $0x3a0] ss:$8 sps:$4 sm:$0xff]  }
 0x179   :  { %1916 = vmatprep.subr.bf16.mxu0 %v2391_v61  ;;  %v2454_v61 = vld [vmem:[%s3331_s3 + $0x3b4] ss:$8 sps:$4 sm:$0xff]  }
 0x17c   :  { %1917 = vmatpush1.bf16.msra.mxu0 %v2389_v62  ;;  %v2452_v62 = vld [vmem:[%s3331_s3 + $0x3b0] ss:$8 sps:$4 sm:$0xff]  }
 0x17d   :  { %1918 = vmatprep.subr.bf16.mxu0 %v2394_v63  ;;  %v2457_v63 = vld [vmem:[%s3331_s3 + $0x3c4] ss:$8 sps:$4 sm:$0xff]  }
 0x180   :  { %1919 = vmatpush1.bf16.msra.mxu0 %v2392_v0  ;;  %v2455_v0 = vld [vmem:[%s3331_s3 + $0x3c0] ss:$8 sps:$4 sm:$0xff]  }
 0x181   :  { %1920 = vmatprep.subr.bf16.mxu0 %v2397_v1  ;;  %v2460_v1 = vld [vmem:[%s3331_s3 + $0x3d4] ss:$8 sps:$4 sm:$0xff]  }
 0x184   :  { %1921 = vmatpush1.bf16.msra.mxu0 %v2395_v2  ;;  %v178_v2 = vsub.s32 6, %v2998_v42 }
 0x185   :  { %1922 = vmatprep.subr.bf16.mxu0 %v2400_v3  ;;  %v182_v3 = vsub.s32 7, %v2998_v42 }
 0x188   :  { %1923 = vmatpush1.bf16.msra.mxu0 %v2398_v4  ;;  %v2458_v4 = vld [vmem:[%s3331_s3 + $0x3d0] ss:$8 sps:$4 sm:$0xff]  }
 0x189   :  { %1924 = vmatprep.subr.bf16.mxu0 %v2403_v5  ;;  %v179_v5 = vrot.slane %v3004_v44, %v178_v2 }
 0x18c   :  { %1925 = vmatpush1.bf16.msra.mxu0 %v2401_v7  ;;  %v2463_v7 = vld [vmem:[%s3331_s3 + $0x3e4] ss:$8 sps:$4 sm:$0xff]  }
 0x18d   :  { %1926 = vmatprep.subr.bf16.mxu0 %v2406_v8  ;;  %v183_v8 = vrot.slane %v3004_v44, %v182_v3  ;;  %v2464_v44 = vld [vmem:[%s3331_s3 + $0x3f0] ss:$8 sps:$4 sm:$0xff]  }
 0x190   :  { %1927 = vmatpush1.bf16.msra.mxu0 %v2404_v9 }
 0x191   :  { %1928 = vmatprep.subr.bf16.mxu0 %v2409_v10  ;;  %v2461_v10 = vld [vmem:[%s3331_s3 + $0x3e0] ss:$8 sps:$4 sm:$0xff]  }
 0x194   :  { %1929 = vmatpush1.bf16.msra.mxu0 %v2407_v11 }
 0x195   :  { %1930 = vmatprep.subr.bf16.mxu0 %v2412_v12 }
 0x198   :  { %v962_v20 = vpop.f32.mrb[8].mxu1  ;;  %1931 = vmatpush1.bf16.msra.mxu0 %v2410_v15 }
 0x199   :  { %v963_v22 = vadd.f32 %v962_v20, %v171_v16  ;;  %v964_v23 = vpop.f32.mrb[9].mxu1  ;;  %1932 = vmatprep.subr.bf16.mxu0 %v2415_v18 }
 0x19a   :  { %v965_v25 = vadd.f32 %v964_v23, %v175_v19  ;;  %v966_v26 = vpop.f32.mrb[10].mxu1 }
 0x19b   :  { %v1018_v27 = vmax.f32 %v963_v22, 0.0  ;;  %v967_v28 = vadd.f32 %v966_v26, %v171_v16  ;;  %v968_v29 = vpop.f32.mrb[11].mxu1  ;;  %v1166_v26 = vld [vmem:[%s3333_s4] sm:$0x3] }
 0x19c   :  { %v969_v30 = vadd.f32 %v968_v29, %v175_v19  ;;  %1933 = vmatpush1.bf16.msra.mxu0 %v2413_v21  ;;  %v1019_v34 = vmax.f32 %v965_v25, 0.0 }
 0x19d   :  { %v1026_v32 = vmax.f32 %v967_v28, 0.0  ;;  %1934 = vmatprep.subr.bf16.mxu0 %v2418_v24  ;;  %v1175_v28 = vrot.slane %v1166_v26, %v158_v45 }
 0x19e   :  { %v1027_v35 = vmax.f32 %v969_v30, 0.0 }
 0x19f   :  { %v1034_v36 = vpack.c.bf16 %v1026_v32, %v1018_v27  ;;  %v1171_v27 = vrot.slane %v1166_v26, %v154_v43 }
 0x1a0   :  { %v1035_v37 = vpack.c.bf16 %v1027_v35, %v1019_v34  ;;  %1935 = vmatpush1.bf16.msra.mxu0 %v2416_v31 }
 0x1a1   :  { %1947 = vmatprep.subr.bf16.mxu0 %v2421_v33 }
 0x1a2   :  { %1936 = vmatprep.mubr.bf16.mxu0 %v1035_v37 }
 0x1a3   :  { %1937 = vmatmul.mubr.bf16.vlgmr.msra.gmra.mrb[0].mxu0 %v1034_v36 }
 0x1a4   :  { %1948 = vmatpush1.bf16.msra.mxu0 %v2419_v38 }
 0x1a5   :  { %1949 = vmatprep.subr.bf16.mxu0 %v2424_v39 }
 0x1a8   :  { %1950 = vmatpush1.bf16.msra.mxu0 %v2422_v40 }
 0x1a9   :  { %1951 = vmatprep.subr.bf16.mxu0 %v2427_v41 }
 0x1ac   :  { %1952 = vmatpush1.bf16.msra.mxu0 %v2425_v46 }
 0x1ad   :  { %1953 = vmatprep.subr.bf16.mxu0 %v2430_v6 }
 0x1b0   :  { %1954 = vmatpush1.bf16.msra.mxu0 %v2428_v47 }
 0x1b1   :  { %1955 = vmatprep.subr.bf16.mxu0 %v2433_v48 }
 0x1b4   :  { %1956 = vmatpush1.bf16.msra.mxu0 %v2431_v49 }
 0x1b5   :  { %1957 = vmatprep.subr.bf16.mxu0 %v2436_v50 }
 0x1b8   :  { %1958 = vmatpush1.bf16.msra.mxu0 %v2434_v51 }
 0x1b9   :  { %1959 = vmatprep.subr.bf16.mxu0 %v2439_v52 }
 0x1bc   :  { %1960 = vmatpush1.bf16.msra.mxu0 %v2437_v53 }
 0x1bd   :  { %1961 = vmatprep.subr.bf16.mxu0 %v2442_v54 }
 0x1c0   :  { %1962 = vmatpush1.bf16.msra.mxu0 %v2440_v55 }
 0x1c1   :  { %1963 = vmatprep.subr.bf16.mxu0 %v2445_v17 }
 0x1c4   :  { %1964 = vmatpush1.bf16.msra.mxu0 %v2443_v56 }
 0x1c5   :  { %1965 = vmatprep.subr.bf16.mxu0 %v2448_v57 }
 0x1c8   :  { %1966 = vmatpush1.bf16.msra.mxu0 %v2446_v58 }
 0x1c9   :  { %1967 = vmatprep.subr.bf16.mxu0 %v2451_v59 }
 0x1cc   :  { %1968 = vmatpush1.bf16.msra.mxu0 %v2449_v60 }
 0x1cd   :  { %1969 = vmatprep.subr.bf16.mxu0 %v2454_v61 }
 0x1d0   :  { %1970 = vmatpush1.bf16.msra.mxu0 %v2452_v62 }
 0x1d1   :  { %1971 = vmatprep.subr.bf16.mxu0 %v2457_v63 }
 0x1d4   :  { %1972 = vmatpush1.bf16.msra.mxu0 %v2455_v0 }
 0x1d5   :  { %1973 = vmatprep.subr.bf16.mxu0 %v2460_v1 }
 0x1d8   :  { %v1005_v9 = vpop.f32.mrb[12].mxu1  ;;  %1974 = vmatpush1.bf16.msra.mxu0 %v2458_v4 }
 0x1d9   :  { %v1006_v11 = vadd.f32 %v1005_v9, %v179_v5  ;;  %v1007_v12 = vpop.f32.mrb[13].mxu1  ;;  %1975 = vmatprep.subr.bf16.mxu0 %v2463_v7 }
 0x1da   :  { %v1008_v14 = vadd.f32 %v1007_v12, %v183_v8  ;;  %v1009_v15 = vpop.f32.mrb[14].mxu1 }
 0x1db   :  { %v1010_v16 = vadd.f32 %v1009_v15, %v179_v5  ;;  %v1011_v18 = vpop.f32.mrb[15].mxu1  ;;  %v1020_v20 = vmax.f32 %v1006_v11, 0.0 }
 0x1dc   :  { %v1012_v19 = vadd.f32 %v1011_v18, %v183_v8  ;;  %1976 = vmatpush1.bf16.msra.mxu0 %v2461_v10  ;;  %v1021_v22 = vmax.f32 %v1008_v14, 0.0 }
 0x1dd   :  { %v1028_v21 = vmax.f32 %v1010_v16, 0.0  ;;  %1977 = vmatprep.subr.bf16.mxu0 %v2466_v13 }
 0x1de   :  { %v1029_v23 = vmax.f32 %v1012_v19, 0.0 }
 0x1df   :  { %v1036_v24 = vpack.c.bf16 %v1028_v21, %v1020_v20 }
 0x1e0   :  { %v1037_v25 = vpack.c.bf16 %v1029_v23, %v1021_v22  ;;  %1978 = vmatpush1.bf16.msra.mxu0 %v2464_v44 }
 0x1e2   :  { %1979 = vmatprep.mubr.bf16.mxu0 %v1037_v25 }
 0x1e3   :  { %1980 = vmatmul.mubr.bf16.vlgmr.msra.gmra.mrb[0].mxu0 %v1036_v24 }
 0x2b6   :  { %v1981_v29 = vpop.f32.mrb[0].mxu0 }
 0x2b7   :  { %v2256_v30 = vadd.f32 %v1981_v29, %v1171_v27  ;;  %v1983_v31 = vpop.f32.mrb[1].mxu0 }
 0x2b8   :  { %v2257_v32 = vadd.f32 %v1983_v31, %v1175_v28  ;;  %v1985_v33 = vpop.f32.mrb[2].mxu0 }
 0x2b9   :  { %1990 = vst [vmem:[%s3334_s5] sm:$0xff] %v2256_v30  ;;  %v2258_v34 = vadd.f32 %v1985_v33, %v1171_v27  ;;  %v1987_v35 = vpop.f32.mrb[3].mxu0 }
 0x2ba   :  { %1991 = vst [vmem:[%s3334_s5 + $0x8] sm:$0xff] %v2257_v32  ;;  %v2259_v36 = vadd.f32 %v1987_v35, %v1175_v28 }
 0x2bb   :  { %1992 = vst [vmem:[%s3334_s5 + $0x10] sm:$0xff] %v2258_v34 }
 0x2bc   :  { %1993 = vst [vmem:[%s3334_s5 + $0x18] sm:$0xff] %v2259_v36 }

</bundles_post_ra>
